<compile_context>
chip_gen: v7x
topology: tpu7x:2x2x1
jax: 0.10.0
libtpu: 0.0.40
codegen_flags: <defaults>
</compile_context>

<pallas_src>
import jax
import jax.numpy as jnp
from jax import lax
from jax.experimental import pallas as pl
from jax.experimental.pallas import tpu as pltpu

BN_EPS = 1e-5
LANE = 128
_VMEM_LIMIT = 32 * 1024 * 1024


def _round_up(x, m):
    return ((x + m - 1) // m) * m


# ---------------------------------------------------------------------------
# Pass 1: tiled conv-as-matmul + per-tile BN partial statistics
# ---------------------------------------------------------------------------
def _conv_pass1_kernel(p_ref, w_ref, o_ref, s_ref, q_ref, acc_ref):
    k = pl.program_id(1)

    @pl.when(k == 0)
    def _init():
        acc_ref[...] = jnp.zeros_like(acc_ref)

    acc_ref[...] += jnp.dot(p_ref[...], w_ref[...],
                            preferred_element_type=jnp.float32)

    @pl.when(k == pl.num_programs(1) - 1)
    def _finalize():
        acc = acc_ref[...]
        o_ref[...] = acc
        # Per-channel partial sum / sum-of-squares for train-mode BN.
        # ones-matmul keeps the M reduction on the MXU (extended slot) instead
        # of the XLU; all 8 result rows are identical, row 0 is used later.
        ones = jnp.ones((8, acc.shape[0]), jnp.float32)
        s_ref[...] = jnp.dot(ones, acc, preferred_element_type=jnp.float32)
        q_ref[...] = jnp.dot(ones, acc * acc, preferred_element_type=jnp.float32)


def _conv_pass1(patches, w_mat, tm, tk):
    """patches: (M_pad, K_pad) bf16; w_mat: (K_pad, Coutp) bf16."""
    m_pad, k_pad = patches.shape
    coutp = w_mat.shape[1]
    nm, nk = m_pad // tm, k_pad // tk
    acc, psum, psq = pl.pallas_call(
        _conv_pass1_kernel,
        out_shape=(jax.ShapeDtypeStruct((m_pad, coutp), jnp.float32),
                   jax.ShapeDtypeStruct((nm * 8, coutp), jnp.float32),
                   jax.ShapeDtypeStruct((nm * 8, coutp), jnp.float32)),
        grid_spec=pltpu.PrefetchScalarGridSpec(
            num_scalar_prefetch=0,
            grid=(nm, nk),
            in_specs=[pl.BlockSpec((tm, tk), lambda i, k: (i, k)),
                      pl.BlockSpec((tk, coutp), lambda i, k: (k, 0))],
            out_specs=(pl.BlockSpec((tm, coutp), lambda i, k: (i, 0)),
                       pl.BlockSpec((8, coutp), lambda i, k: (i, 0)),
                       pl.BlockSpec((8, coutp), lambda i, k: (i, 0))),
            scratch_shapes=[pltpu.VMEM((tm, coutp), jnp.float32)]),
        compiler_params=pltpu.CompilerParams(
            dimension_semantics=("parallel", "arbitrary"),
            vmem_limit_bytes=_VMEM_LIMIT),
    )(patches, w_mat)
    # Row 0 of each 8-row group is that tile's per-channel column sum.
    col_sum = jnp.sum(psum[0::8, :], axis=0)
    col_sumsq = jnp.sum(psq[0::8, :], axis=0)
    return acc, col_sum, col_sumsq


# ---------------------------------------------------------------------------
# Pass 2: folded BN scale/shift FMA (+ ReLU, + residual)
# ---------------------------------------------------------------------------
def _bn_relu_kernel(a_ref, sc_ref, sh_ref, o_ref):
    y = a_ref[...] * sc_ref[...] + sh_ref[...]
    o_ref[...] = jnp.maximum(y, 0.0).astype(o_ref.dtype)


def _bn_add_relu_kernel(a_ref, r_ref, sa_ref, ba_ref, sr_ref, br_ref, o_ref):
    y = (a_ref[...] * sa_ref[...] + ba_ref[...]
         + r_ref[...] * sr_ref[...] + br_ref[...])
    o_ref[...] = jnp.maximum(y, 0.0).astype(o_ref.dtype)


def _bn_relu(acc, scale, shift, tm, out_dtype=jnp.bfloat16):
    m_pad, coutp = acc.shape
    nm = m_pad // tm
    big = pl.BlockSpec((tm, coutp), lambda i: (i, 0))
    vec = pl.BlockSpec((1, coutp), lambda i: (0, 0))
    return pl.pallas_call(
        _bn_relu_kernel,
        out_shape=jax.ShapeDtypeStruct((m_pad, coutp), out_dtype),
        grid_spec=pltpu.PrefetchScalarGridSpec(
            num_scalar_prefetch=0,
            grid=(nm,),
            in_specs=[big, vec, vec],
            out_specs=big),
        compiler_params=pltpu.CompilerParams(
            dimension_semantics=("parallel",),
            vmem_limit_bytes=_VMEM_LIMIT),
    )(acc, scale, shift)


def _bn_add_relu(a, r, sa, ba, sr, br, tm):
    m_pad, coutp = a.shape
    nm = m_pad // tm
    big = pl.BlockSpec((tm, coutp), lambda i: (i, 0))
    vec = pl.BlockSpec((1, coutp), lambda i: (0, 0))
    return pl.pallas_call(
        _bn_add_relu_kernel,
        out_shape=jax.ShapeDtypeStruct((m_pad, coutp), jnp.float32),
        grid_spec=pltpu.PrefetchScalarGridSpec(
            num_scalar_prefetch=0,
            grid=(nm,),
            in_specs=[big, big, vec, vec, vec, vec],
            out_specs=big),
        compiler_params=pltpu.CompilerParams(
            dimension_semantics=("parallel",),
            vmem_limit_bytes=_VMEM_LIMIT),
    )(a, r, sa, ba, sr, br)


# ---------------------------------------------------------------------------
# Wrapper-side helpers (im2col, padding, BN scale/shift folding)
# ---------------------------------------------------------------------------
def _im2col(x_nhwc, kh, kw, stride, padding, dilation):
    n, _, _, cin = x_nhwc.shape
    sh, sw = stride
    ph, pw = padding
    dh, dw = dilation
    if ph or pw:
        x_nhwc = jnp.pad(x_nhwc, ((0, 0), (ph, ph), (pw, pw), (0, 0)))
    hp, wp = x_nhwc.shape[1], x_nhwc.shape[2]
    ho = (hp - (dh * (kh - 1) + 1)) // sh + 1
    wo = (wp - (dw * (kw - 1) + 1)) // sw + 1
    cols = []
    for i in range(kh):
        for j in range(kw):
            r0, c0 = i * dh, j * dw
            cols.append(x_nhwc[:, r0:r0 + sh * (ho - 1) + 1:sh,
                               c0:c0 + sw * (wo - 1) + 1:sw, :])
    patches = jnp.concatenate(cols, axis=-1).reshape(n * ho * wo, kh * kw * cin)
    return patches, ho, wo


def _pad_operands(patches, w_kc, tm_target=256, tk_target=512):
    """Pad (M,K)x(K,Cout) to lane/sublane-friendly tiles; cast to bf16."""
    m, k = patches.shape
    cout = w_kc.shape[1]
    coutp = _round_up(cout, LANE)
    if m >= tm_target:
        tm = tm_target
        m_pad = _round_up(m, tm)
    else:
        tm = _round_up(m, 8)
        m_pad = tm
    if k >= tk_target:
        tk = tk_target
        k_pad = _round_up(k, tk)
    else:
        tk = _round_up(k, 8)
        k_pad = tk
    p = jnp.pad(patches, ((0, m_pad - m), (0, k_pad - k))).astype(jnp.bfloat16)
    w = jnp.pad(w_kc, ((0, k_pad - k), (0, coutp - cout))).astype(jnp.bfloat16)
    return p, w, tm, tk


def _conv_bn_pass1(x_nhwc, weight_oihw, stride, padding, dilation):
    cout, cin, kh, kw = weight_oihw.shape
    patches, ho, wo = _im2col(x_nhwc, kh, kw, stride, padding, dilation)
    m = patches.shape[0]
    # (Cout,Cin,KH,KW) -> (KH,KW,Cin,Cout) -> (K,Cout); matches patch column
    # order (kh, kw, cin).
    w_kc = jnp.transpose(weight_oihw.astype(jnp.float32),
                         (2, 3, 1, 0)).reshape(kh * kw * cin, cout)
    p_pad, w_pad, tm, tk = _pad_operands(patches, w_kc)
    acc, col_sum, col_sq = _conv_pass1(p_pad, w_pad, tm, tk)
    return acc, col_sum, col_sq, m, tm, ho, wo


def _bn_scale_shift(col_sum, col_sq, m, gamma, beta, coutp):
    # Train-mode BN: biased variance over (N, H, W).  Conv bias is omitted
    # upstream - mean subtraction cancels it exactly.
    mean = col_sum / m
    var = jnp.maximum(col_sq / m - mean * mean, 0.0)
    g = jnp.pad(gamma.astype(jnp.float32), (0, coutp - gamma.shape[0]))
    b = jnp.pad(beta.astype(jnp.float32), (0, coutp - beta.shape[0]))
    scale = g * lax.rsqrt(var + BN_EPS)
    shift = b - mean * scale
    return scale.reshape(1, coutp), shift.reshape(1, coutp)


# ---------------------------------------------------------------------------
# Full ResConvBlockWithBn forward
# ---------------------------------------------------------------------------
def res_conv_block_with_bn(x_nchw, params, stride=(1, 1), dilation=(1, 1)):
    """params: w1/g1/b1 (conv3x3+BN+ReLU), w2/g2/b2 (conv3x3+BN),
    optional w3/g3/b3 (1x1 downsample conv+BN).  Conv biases cancel under
    train-mode BN and are therefore not needed."""
    n, cin, h, w = x_nchw.shape
    cout = params["w1"].shape[0]
    coutp = _round_up(cout, LANE)

    # NCHW -> NHWC once at the boundary; keep NHWC / (M, C) internally.
    x = jnp.transpose(x_nchw, (0, 2, 3, 1)).astype(jnp.float32)

    # --- branch A, conv1: 3x3, stride, pad=1, BN, ReLU -----------------------
    acc1, s1, q1, m1, tm1, ho, wo = _conv_bn_pass1(
        x, params["w1"], stride, (1, 1), dilation)
    sc1, sh1 = _bn_scale_shift(s1, q1, m1, params["g1"], params["b1"], coutp)
    h1 = _bn_relu(acc1, sc1, sh1, tm1, out_dtype=jnp.bfloat16)
    h1 = h1[:m1, :cout].reshape(n, ho, wo, cout)

    # --- branch A, conv2: 3x3, stride 1, pad=1, BN (ReLU deferred) -----------
    acc2, s2, q2, m2, tm2, ho2, wo2 = _conv_bn_pass1(
        h1, params["w2"], (1, 1), (1, 1), dilation)
    sc2, sh2 = _bn_scale_shift(s2, q2, m2, params["g2"], params["b2"], coutp)

    # --- branch B: identity, or 1x1 conv + BN downsample ----------------------
    if stride != (1, 1) or cin != cout:
        acc3, s3, q3, m3, tm3, _, _ = _conv_bn_pass1(
            x, params["w3"], stride, (0, 0), (1, 1))
        assert acc3.shape[0] == acc2.shape[0] and m3 == m2
        sc3, sh3 = _bn_scale_shift(s3, q3, m3, params["g3"], params["b3"], coutp)
        res = acc3
    else:
        res = x.reshape(n * h * w, cin)
        res = jnp.pad(res, ((0, acc2.shape[0] - res.shape[0]),
                            (0, coutp - cin)))
        sc3 = jnp.ones((1, coutp), jnp.float32)
        sh3 = jnp.zeros((1, coutp), jnp.float32)

    # --- fused: ReLU(BN(conv2) + residual) ------------------------------------
    out = _bn_add_relu(acc2, res, sc2, sh2, sc3, sh3, tm2)
    out = out[:m2, :cout].reshape(n, ho2, wo2, cout)
    return jnp.transpose(out, (0, 3, 1, 2))   # back to NCHW at the boundary


# ---------------------------------------------------------------------------
# Pure-JAX reference (mirrors the torch module, incl. conv bias; conv inputs
# are cast to bf16 to mirror the kernel's MXU operand precision)
# ---------------------------------------------------------------------------
def _ref_conv_bn(x, w, b, gamma, beta, stride, padding, relu):
    y = lax.conv_general_dilated(
        x.astype(jnp.bfloat16), w.astype(jnp.bfloat16),
        window_strides=stride,
        padding=[(padding[0], padding[0]), (padding[1], padding[1])],
        dimension_numbers=("NCHW", "OIHW", "NCHW"),
        preferred_element_type=jnp.float32)
    y = y + b.reshape(1, -1, 1, 1)
    mean = jnp.mean(y, axis=(0, 2, 3), keepdims=True)
    var = jnp.mean((y - mean) ** 2, axis=(0, 2, 3), keepdims=True)
    y = (y - mean) * lax.rsqrt(var + BN_EPS)
    y = y * gamma.reshape(1, -1, 1, 1) + beta.reshape(1, -1, 1, 1)
    return jnp.maximum(y, 0.0) if relu else y


def _ref_block(x, p, stride=(1, 1)):
    x2 = _ref_conv_bn(x, p["w1"], p["c1"], p["g1"], p["b1"], stride, (1, 1), True)
    x2 = _ref_conv_bn(x2, p["w2"], p["c2"], p["g2"], p["b2"], (1, 1), (1, 1), False)
    cin, cout = x.shape[1], p["w1"].shape[0]
    if stride != (1, 1) or cin != cout:
        x1 = _ref_conv_bn(x, p["w3"], p["c3"], p["g3"], p["b3"], stride, (0, 0), False)
    else:
        x1 = x
    return jnp.maximum(x1 + x2, 0.0)


def _make_params(key, cin, cout, kh=3, kw=3, with_down=True):
    ks = jax.random.split(key, 12)

    def conv_init(k, co, ci, a, b):
        bound = 1.0 / (ci * a * b) ** 0.5
        return jax.random.uniform(k, (co, ci, a, b), minval=-bound,
                                  maxval=bound, dtype=jnp.float32)

    def bias_init(k, ci, a, b, co):
        bound = 1.0 / (ci * a * b) ** 0.5
        return jax.random.uniform(k, (co,), minval=-bound, maxval=bound,
                                  dtype=jnp.float32)

    p = dict(
        w1=conv_init(ks[0], cout, cin, kh, kw),
        c1=bias_init(ks[1], cin, kh, kw, cout),
        g1=jax.random.uniform(ks[2], (cout,), minval=0.5, maxval=1.5),
        b1=jax.random.uniform(ks[3], (cout,), minval=-0.5, maxval=0.5),
        w2=conv_init(ks[4], cout, cout, kh, kw),
        c2=bias_init(ks[5], cout, kh, kw, cout),
        g2=jax.random.uniform(ks[6], (cout,), minval=0.5, maxval=1.5),
        b2=jax.random.uniform(ks[7], (cout,), minval=-0.5, maxval=0.5),
    )
    if with_down:
        p.update(
            w3=conv_init(ks[8], cout, cin, 1, 1),
            c3=bias_init(ks[9], cin, 1, 1, cout),
            g3=jax.random.uniform(ks[10], (cout,), minval=0.5, maxval=1.5),
            b3=jax.random.uniform(ks[11], (cout,), minval=-0.5, maxval=0.5))
    return p


if __name__ == "__main__":
    key = jax.random.PRNGKey(0)
    kx, kp1, kp2 = jax.random.split(key, 3)

    block = jax.jit(res_conv_block_with_bn, static_argnames=("stride", "dilation"))

    # Config 1: in_channels != out_channels -> 1x1 downsample conv on residual.
    n, cin, h, w, cout = 2, 4, 16, 16, 8
    x = jax.random.normal(kx, (n, cin, h, w), dtype=jnp.float32)
    p1 = _make_params(kp1, cin, cout, with_down=True)
    out1 = jax.block_until_ready(block(x, p1, stride=(1, 1)))
    ref1 = jax.block_until_ready(_ref_block(x, p1, stride=(1, 1)))
    assert out1.shape == (n, cout, h, w), out1.shape
    assert jnp.allclose(out1, ref1, atol=2e-2, rtol=2e-2), \
        float(jnp.max(jnp.abs(out1 - ref1)))

    # Config 2: in_channels == out_channels, stride 1 -> identity residual.
    x2 = jax.random.normal(kx, (n, cout, h, w), dtype=jnp.float32)
    p2 = _make_params(kp2, cout, cout, with_down=False)
    out2 = jax.block_until_ready(block(x2, p2, stride=(1, 1)))
    ref2 = jax.block_until_ready(_ref_block(x2, p2, stride=(1, 1)))
    assert out2.shape == (n, cout, h, w), out2.shape
    assert jnp.allclose(out2, ref2, atol=2e-2, rtol=2e-2), \
        float(jnp.max(jnp.abs(out2 - ref2)))

    print("KERNEL_OK")
</pallas_src>

<mosaic_0001>
module attributes {stable_mosaic.version = 11 : i64} {
  func.func @_conv_pass1_kernel(%arg0: i32, %arg1: i32, %arg2: memref<256x40xbf16, #tpu.memory_space<vmem>>, %arg3: memref<40x128xbf16, #tpu.memory_space<vmem>>, %arg4: memref<256x128xf32, #tpu.memory_space<vmem>>, %arg5: memref<8x128xf32, #tpu.memory_space<vmem>>, %arg6: memref<8x128xf32, #tpu.memory_space<vmem>>, %arg7: memref<256x128xf32, #tpu.memory_space<vmem>>) attributes {dimension_semantics = [#tpu.dimension_semantics<parallel>, #tpu.dimension_semantics<arbitrary>], iteration_bounds = array<i64: 2, 1>, scalar_prefetch = 0 : i64, scratch_operands = 1 : i64, tpu.core_type = #tpu.core_type<tc>, window_params = [{transform_indices = @transform_0, window_bounds = array<i64: 256, 40>}, {transform_indices = @transform_1, window_bounds = array<i64: 40, 128>}, {transform_indices = @transform_2, window_bounds = array<i64: 256, 128>}, {transform_indices = @transform_3, window_bounds = array<i64: 8, 128>}, {transform_indices = @transform_4, window_bounds = array<i64: 8, 128>}]} {
    %c0_i32 = arith.constant 0 : i32
    %0 = arith.cmpi eq, %arg1, %c0_i32 : i32
    %1 = arith.extui %0 : i1 to i32
    %c0_i32_0 = arith.constant 0 : i32
    %2 = arith.cmpi ne, %1, %c0_i32_0 : i32
    scf.if %2 {
      %cst_10 = arith.constant 0.000000e+00 : f32
      %12 = vector.broadcast %cst_10 : f32 to vector<256x128xf32>
      %c0_11 = arith.constant 0 : index
      %c0_12 = arith.constant 0 : index
      %13 = vector.load %arg7[%c0_11, %c0_12] : memref<256x128xf32, #tpu.memory_space<vmem>>, vector<256x128xf32>
      tpu.vector_store %arg7[%c0_11, %c0_12], %12 {strides = array<i32>} : memref<256x128xf32, #tpu.memory_space<vmem>>, vector<256x128xf32>,
    } else {
    }
    %c0 = arith.constant 0 : index
    %c0_1 = arith.constant 0 : index
    %3 = vector.load %arg7[%c0, %c0_1] : memref<256x128xf32, #tpu.memory_space<vmem>>, vector<256x128xf32>
    %c0_2 = arith.constant 0 : index
    %c0_3 = arith.constant 0 : index
    %4 = vector.load %arg2[%c0_2, %c0_3] : memref<256x40xbf16, #tpu.memory_space<vmem>>, vector<256x40xbf16>
    %c0_4 = arith.constant 0 : index
    %c0_5 = arith.constant 0 : index
    %5 = vector.load %arg3[%c0_4, %c0_5] : memref<40x128xbf16, #tpu.memory_space<vmem>>, vector<40x128xbf16>
    %cst = arith.constant dense<0.000000e+00> : vector<256x128xf32>
    %6 = tpu.matmul %4, %5, %cst {dimension_numbers = #tpu.dot_dimension_numbers<[1], [0], [0], [1], [0, 0, 1, 1], [], []>} : vector<256x40xbf16>, vector<40x128xbf16>, vector<256x128xf32> -> vector<256x128xf32>
    %7 = arith.addf %3, %6 : vector<256x128xf32>
    %c0_6 = arith.constant 0 : index
    %c0_7 = arith.constant 0 : index
    %8 = vector.load %arg7[%c0_6, %c0_7] : memref<256x128xf32, #tpu.memory_space<vmem>>, vector<256x128xf32>
    tpu.vector_store %arg7[%c0_6, %c0_7], %7 {strides = array<i32>} : memref<256x128xf32, #tpu.memory_space<vmem>>, vector<256x128xf32>,
    %c0_i32_8 = arith.constant 0 : i32
    %9 = arith.cmpi eq, %arg1, %c0_i32_8 : i32
    %10 = arith.extui %9 : i1 to i32
    %c0_i32_9 = arith.constant 0 : i32
    %11 = arith.cmpi ne, %10, %c0_i32_9 : i32
    scf.if %11 {
      %c0_10 = arith.constant 0 : index
      %c0_11 = arith.constant 0 : index
      %12 = vector.load %arg7[%c0_10, %c0_11] : memref<256x128xf32, #tpu.memory_space<vmem>>, vector<256x128xf32>
      %c0_12 = arith.constant 0 : index
      %c0_13 = arith.constant 0 : index
      %13 = vector.load %arg4[%c0_12, %c0_13] : memref<256x128xf32, #tpu.memory_space<vmem>>, vector<256x128xf32>
      tpu.vector_store %arg4[%c0_12, %c0_13], %12 {strides = array<i32>} : memref<256x128xf32, #tpu.memory_space<vmem>>, vector<256x128xf32>,
      %cst_14 = arith.constant 1.000000e+00 : f32
      %14 = vector.broadcast %cst_14 : f32 to vector<8x256xf32>
      %cst_15 = arith.constant dense<0.000000e+00> : vector<8x128xf32>
      %15 = tpu.matmul %14, %12, %cst_15 {dimension_numbers = #tpu.dot_dimension_numbers<[1], [0], [0], [1], [0, 0, 1, 1], [], []>} : vector<8x256xf32>, vector<256x128xf32>, vector<8x128xf32> -> vector<8x128xf32>
      %c0_16 = arith.constant 0 : index
      %c0_17 = arith.constant 0 : index
      %16 = vector.load %arg5[%c0_16, %c0_17] : memref<8x128xf32, #tpu.memory_space<vmem>>, vector<8x128xf32>
      tpu.vector_store %arg5[%c0_16, %c0_17], %15 {strides = array<i32>} : memref<8x128xf32, #tpu.memory_space<vmem>>, vector<8x128xf32>,
      %17 = arith.mulf %12, %12 : vector<256x128xf32>
      %cst_18 = arith.constant dense<0.000000e+00> : vector<8x128xf32>
      %18 = tpu.matmul %14, %17, %cst_18 {dimension_numbers = #tpu.dot_dimension_numbers<[1], [0], [0], [1], [0, 0, 1, 1], [], []>} : vector<8x256xf32>, vector<256x128xf32>, vector<8x128xf32> -> vector<8x128xf32>
      %c0_19 = arith.constant 0 : index
      %c0_20 = arith.constant 0 : index
      %19 = vector.load %arg6[%c0_19, %c0_20] : memref<8x128xf32, #tpu.memory_space<vmem>>, vector<8x128xf32>
      tpu.vector_store %arg6[%c0_19, %c0_20], %18 {strides = array<i32>} : memref<8x128xf32, #tpu.memory_space<vmem>>, vector<8x128xf32>,
    } else {
    }
    return
  }
  func.func @transform_0(%arg0: i32, %arg1: i32) -> (i32, i32) {
    %c0_i32 = arith.constant 0 : i32
    return %arg0, %arg1 : i32, i32
  }
  func.func @transform_1(%arg0: i32, %arg1: i32) -> (i32, i32) {
    %c0_i32 = arith.constant 0 : i32
    %c0_i32_0 = arith.constant 0 : i32
    return %arg1, %c0_i32 : i32, i32
  }
  func.func @transform_2(%arg0: i32, %arg1: i32) -> (i32, i32) {
    %c0_i32 = arith.constant 0 : i32
    %c0_i32_0 = arith.constant 0 : i32
    return %arg0, %c0_i32 : i32, i32
  }
  func.func @transform_3(%arg0: i32, %arg1: i32) -> (i32, i32) {
    %c0_i32 = arith.constant 0 : i32
    %c0_i32_0 = arith.constant 0 : i32
    return %arg0, %c0_i32 : i32, i32
  }
  func.func @transform_4(%arg0: i32, %arg1: i32) -> (i32, i32) {
    %c0_i32 = arith.constant 0 : i32
    %c0_i32_0 = arith.constant 0 : i32
    return %arg0, %c0_i32 : i32, i32
  }
}

module attributes {stable_mosaic.version = 11 : i64} {
  func.func @_bn_relu_kernel(%arg0: i32, %arg1: memref<256x128xf32, #tpu.memory_space<vmem>>, %arg2: memref<1x128xf32, #tpu.memory_space<vmem>>, %arg3: memref<1x128xf32, #tpu.memory_space<vmem>>, %arg4: memref<256x128xbf16, #tpu.memory_space<vmem>>) attributes {dimension_semantics = [#tpu.dimension_semantics<parallel>], iteration_bounds = array<i64: 2>, scalar_prefetch = 0 : i64, scratch_operands = 0 : i64, tpu.core_type = #tpu.core_type<tc>, window_params = [{transform_indices = @transform_0, window_bounds = array<i64: 256, 128>}, {pipeline_mode = #tpu.pipeline_mode<synchronous>, transform_indices = @transform_1, window_bounds = array<i64: 1, 128>}, {pipeline_mode = #tpu.pipeline_mode<synchronous>, transform_indices = @transform_2, window_bounds = array<i64: 1, 128>}, {transform_indices = @transform_3, window_bounds = array<i64: 256, 128>}]} {
    %c0 = arith.constant 0 : index
    %c0_0 = arith.constant 0 : index
    %0 = vector.load %arg1[%c0, %c0_0] : memref<256x128xf32, #tpu.memory_space<vmem>>, vector<256x128xf32>
    %c0_1 = arith.constant 0 : index
    %c0_2 = arith.constant 0 : index
    %1 = vector.load %arg2[%c0_1, %c0_2] : memref<1x128xf32, #tpu.memory_space<vmem>>, vector<1x128xf32>
    %2 = vector.broadcast %1 : vector<1x128xf32> to vector<256x128xf32>
    %3 = arith.mulf %0, %2 : vector<256x128xf32>
    %c0_3 = arith.constant 0 : index
    %c0_4 = arith.constant 0 : index
    %4 = vector.load %arg3[%c0_3, %c0_4] : memref<1x128xf32, #tpu.memory_space<vmem>>, vector<1x128xf32>
    %5 = vector.broadcast %4 : vector<1x128xf32> to vector<256x128xf32>
    %6 = arith.addf %3, %5 : vector<256x128xf32>
    %cst = arith.constant 0.000000e+00 : f32
    %7 = vector.broadcast %cst : f32 to vector<256x128xf32>
    %8 = arith.maximumf %6, %7 : vector<256x128xf32>
    %9 = arith.truncf %8 : vector<256x128xf32> to vector<256x128xbf16>
    %c0_5 = arith.constant 0 : index
    %c0_6 = arith.constant 0 : index
    %10 = vector.load %arg4[%c0_5, %c0_6] : memref<256x128xbf16, #tpu.memory_space<vmem>>, vector<256x128xbf16>
    tpu.vector_store %arg4[%c0_5, %c0_6], %9 {strides = array<i32>} : memref<256x128xbf16, #tpu.memory_space<vmem>>, vector<256x128xbf16>,
    return
  }
  func.func @transform_0(%arg0: i32) -> (i32, i32) {
    %c0_i32 = arith.constant 0 : i32
    %c0_i32_0 = arith.constant 0 : i32
    return %arg0, %c0_i32 : i32, i32
  }
  func.func @transform_1(%arg0: i32) -> (i32, i32) {
    %c0_i32 = arith.constant 0 : i32
    %c0_i32_0 = arith.constant 0 : i32
    %c0_i32_1 = arith.constant 0 : i32
    return %c0_i32, %c0_i32_0 : i32, i32
  }
  func.func @transform_2(%arg0: i32) -> (i32, i32) {
    %c0_i32 = arith.constant 0 : i32
    %c0_i32_0 = arith.constant 0 : i32
    %c0_i32_1 = arith.constant 0 : i32
    return %c0_i32, %c0_i32_0 : i32, i32
  }
  func.func @transform_3(%arg0: i32) -> (i32, i32) {
    %c0_i32 = arith.constant 0 : i32
    %c0_i32_0 = arith.constant 0 : i32
    return %arg0, %c0_i32 : i32, i32
  }
}

module attributes {stable_mosaic.version = 11 : i64} {
  func.func @_conv_pass1_kernel(%arg0: i32, %arg1: i32, %arg2: memref<256x72xbf16, #tpu.memory_space<vmem>>, %arg3: memref<72x128xbf16, #tpu.memory_space<vmem>>, %arg4: memref<256x128xf32, #tpu.memory_space<vmem>>, %arg5: memref<8x128xf32, #tpu.memory_space<vmem>>, %arg6: memref<8x128xf32, #tpu.memory_space<vmem>>, %arg7: memref<256x128xf32, #tpu.memory_space<vmem>>) attributes {dimension_semantics = [#tpu.dimension_semantics<parallel>, #tpu.dimension_semantics<arbitrary>], iteration_bounds = array<i64: 2, 1>, scalar_prefetch = 0 : i64, scratch_operands = 1 : i64, tpu.core_type = #tpu.core_type<tc>, window_params = [{transform_indices = @transform_0, window_bounds = array<i64: 256, 72>}, {transform_indices = @transform_1, window_bounds = array<i64: 72, 128>}, {transform_indices = @transform_2, window_bounds = array<i64: 256, 128>}, {transform_indices = @transform_3, window_bounds = array<i64: 8, 128>}, {transform_indices = @transform_4, window_bounds = array<i64: 8, 128>}]} {
    %c0_i32 = arith.constant 0 : i32
    %0 = arith.cmpi eq, %arg1, %c0_i32 : i32
    %1 = arith.extui %0 : i1 to i32
    %c0_i32_0 = arith.constant 0 : i32
    %2 = arith.cmpi ne, %1, %c0_i32_0 : i32
    scf.if %2 {
      %cst_10 = arith.constant 0.000000e+00 : f32
      %12 = vector.broadcast %cst_10 : f32 to vector<256x128xf32>
      %c0_11 = arith.constant 0 : index
      %c0_12 = arith.constant 0 : index
      %13 = vector.load %arg7[%c0_11, %c0_12] : memref<256x128xf32, #tpu.memory_space<vmem>>, vector<256x128xf32>
      tpu.vector_store %arg7[%c0_11, %c0_12], %12 {strides = array<i32>} : memref<256x128xf32, #tpu.memory_space<vmem>>, vector<256x128xf32>,
    } else {
    }
    %c0 = arith.constant 0 : index
    %c0_1 = arith.constant 0 : index
    %3 = vector.load %arg7[%c0, %c0_1] : memref<256x128xf32, #tpu.memory_space<vmem>>, vector<256x128xf32>
    %c0_2 = arith.constant 0 : index
    %c0_3 = arith.constant 0 : index
    %4 = vector.load %arg2[%c0_2, %c0_3] : memref<256x72xbf16, #tpu.memory_space<vmem>>, vector<256x72xbf16>
    %c0_4 = arith.constant 0 : index
    %c0_5 = arith.constant 0 : index
    %5 = vector.load %arg3[%c0_4, %c0_5] : memref<72x128xbf16, #tpu.memory_space<vmem>>, vector<72x128xbf16>
    %cst = arith.constant dense<0.000000e+00> : vector<256x128xf32>
    %6 = tpu.matmul %4, %5, %cst {dimension_numbers = #tpu.dot_dimension_numbers<[1], [0], [0], [1], [0, 0, 1, 1], [], []>} : vector<256x72xbf16>, vector<72x128xbf16>, vector<256x128xf32> -> vector<256x128xf32>
    %7 = arith.addf %3, %6 : vector<256x128xf32>
    %c0_6 = arith.constant 0 : index
    %c0_7 = arith.constant 0 : index
    %8 = vector.load %arg7[%c0_6, %c0_7] : memref<256x128xf32, #tpu.memory_space<vmem>>, vector<256x128xf32>
    tpu.vector_store %arg7[%c0_6, %c0_7], %7 {strides = array<i32>} : memref<256x128xf32, #tpu.memory_space<vmem>>, vector<256x128xf32>,
    %c0_i32_8 = arith.constant 0 : i32
    %9 = arith.cmpi eq, %arg1, %c0_i32_8 : i32
    %10 = arith.extui %9 : i1 to i32
    %c0_i32_9 = arith.constant 0 : i32
    %11 = arith.cmpi ne, %10, %c0_i32_9 : i32
    scf.if %11 {
      %c0_10 = arith.constant 0 : index
      %c0_11 = arith.constant 0 : index
      %12 = vector.load %arg7[%c0_10, %c0_11] : memref<256x128xf32, #tpu.memory_space<vmem>>, vector<256x128xf32>
      %c0_12 = arith.constant 0 : index
      %c0_13 = arith.constant 0 : index
      %13 = vector.load %arg4[%c0_12, %c0_13] : memref<256x128xf32, #tpu.memory_space<vmem>>, vector<256x128xf32>
      tpu.vector_store %arg4[%c0_12, %c0_13], %12 {strides = array<i32>} : memref<256x128xf32, #tpu.memory_space<vmem>>, vector<256x128xf32>,
      %cst_14 = arith.constant 1.000000e+00 : f32
      %14 = vector.broadcast %cst_14 : f32 to vector<8x256xf32>
      %cst_15 = arith.constant dense<0.000000e+00> : vector<8x128xf32>
      %15 = tpu.matmul %14, %12, %cst_15 {dimension_numbers = #tpu.dot_dimension_numbers<[1], [0], [0], [1], [0, 0, 1, 1], [], []>} : vector<8x256xf32>, vector<256x128xf32>, vector<8x128xf32> -> vector<8x128xf32>
      %c0_16 = arith.constant 0 : index
      %c0_17 = arith.constant 0 : index
      %16 = vector.load %arg5[%c0_16, %c0_17] : memref<8x128xf32, #tpu.memory_space<vmem>>, vector<8x128xf32>
      tpu.vector_store %arg5[%c0_16, %c0_17], %15 {strides = array<i32>} : memref<8x128xf32, #tpu.memory_space<vmem>>, vector<8x128xf32>,
      %17 = arith.mulf %12, %12 : vector<256x128xf32>
      %cst_18 = arith.constant dense<0.000000e+00> : vector<8x128xf32>
      %18 = tpu.matmul %14, %17, %cst_18 {dimension_numbers = #tpu.dot_dimension_numbers<[1], [0], [0], [1], [0, 0, 1, 1], [], []>} : vector<8x256xf32>, vector<256x128xf32>, vector<8x128xf32> -> vector<8x128xf32>
      %c0_19 = arith.constant 0 : index
      %c0_20 = arith.constant 0 : index
      %19 = vector.load %arg6[%c0_19, %c0_20] : memref<8x128xf32, #tpu.memory_space<vmem>>, vector<8x128xf32>
      tpu.vector_store %arg6[%c0_19, %c0_20], %18 {strides = array<i32>} : memref<8x128xf32, #tpu.memory_space<vmem>>, vector<8x128xf32>,
    } else {
    }
    return
  }
  func.func @transform_0(%arg0: i32, %arg1: i32) -> (i32, i32) {
    %c0_i32 = arith.constant 0 : i32
    return %arg0, %arg1 : i32, i32
  }
  func.func @transform_1(%arg0: i32, %arg1: i32) -> (i32, i32) {
    %c0_i32 = arith.constant 0 : i32
    %c0_i32_0 = arith.constant 0 : i32
    return %arg1, %c0_i32 : i32, i32
  }
  func.func @transform_2(%arg0: i32, %arg1: i32) -> (i32, i32) {
    %c0_i32 = arith.constant 0 : i32
    %c0_i32_0 = arith.constant 0 : i32
    return %arg0, %c0_i32 : i32, i32
  }
  func.func @transform_3(%arg0: i32, %arg1: i32) -> (i32, i32) {
    %c0_i32 = arith.constant 0 : i32
    %c0_i32_0 = arith.constant 0 : i32
    return %arg0, %c0_i32 : i32, i32
  }
  func.func @transform_4(%arg0: i32, %arg1: i32) -> (i32, i32) {
    %c0_i32 = arith.constant 0 : i32
    %c0_i32_0 = arith.constant 0 : i32
    return %arg0, %c0_i32 : i32, i32
  }
}

module attributes {stable_mosaic.version = 11 : i64} {
  func.func @_bn_add_relu_kernel(%arg0: i32, %arg1: memref<256x128xf32, #tpu.memory_space<vmem>>, %arg2: memref<256x128xf32, #tpu.memory_space<vmem>>, %arg3: memref<1x128xf32, #tpu.memory_space<vmem>>, %arg4: memref<1x128xf32, #tpu.memory_space<vmem>>, %arg5: memref<1x128xf32, #tpu.memory_space<vmem>>, %arg6: memref<1x128xf32, #tpu.memory_space<vmem>>, %arg7: memref<256x128xf32, #tpu.memory_space<vmem>>) attributes {dimension_semantics = [#tpu.dimension_semantics<parallel>], iteration_bounds = array<i64: 2>, scalar_prefetch = 0 : i64, scratch_operands = 0 : i64, tpu.core_type = #tpu.core_type<tc>, window_params = [{transform_indices = @transform_0, window_bounds = array<i64: 256, 128>}, {transform_indices = @transform_1, window_bounds = array<i64: 256, 128>}, {pipeline_mode = #tpu.pipeline_mode<synchronous>, transform_indices = @transform_2, window_bounds = array<i64: 1, 128>}, {pipeline_mode = #tpu.pipeline_mode<synchronous>, transform_indices = @transform_3, window_bounds = array<i64: 1, 128>}, {pipeline_mode = #tpu.pipeline_mode<synchronous>, transform_indices = @transform_4, window_bounds = array<i64: 1, 128>}, {pipeline_mode = #tpu.pipeline_mode<synchronous>, transform_indices = @transform_5, window_bounds = array<i64: 1, 128>}, {transform_indices = @transform_6, window_bounds = array<i64: 256, 128>}]} {
    %c0 = arith.constant 0 : index
    %c0_0 = arith.constant 0 : index
    %0 = vector.load %arg1[%c0, %c0_0] : memref<256x128xf32, #tpu.memory_space<vmem>>, vector<256x128xf32>
    %c0_1 = arith.constant 0 : index
    %c0_2 = arith.constant 0 : index
    %1 = vector.load %arg3[%c0_1, %c0_2] : memref<1x128xf32, #tpu.memory_space<vmem>>, vector<1x128xf32>
    %2 = vector.broadcast %1 : vector<1x128xf32> to vector<256x128xf32>
    %3 = arith.mulf %0, %2 : vector<256x128xf32>
    %c0_3 = arith.constant 0 : index
    %c0_4 = arith.constant 0 : index
    %4 = vector.load %arg4[%c0_3, %c0_4] : memref<1x128xf32, #tpu.memory_space<vmem>>, vector<1x128xf32>
    %5 = vector.broadcast %4 : vector<1x128xf32> to vector<256x128xf32>
    %6 = arith.addf %3, %5 : vector<256x128xf32>
    %c0_5 = arith.constant 0 : index
    %c0_6 = arith.constant 0 : index
    %7 = vector.load %arg2[%c0_5, %c0_6] : memref<256x128xf32, #tpu.memory_space<vmem>>, vector<256x128xf32>
    %c0_7 = arith.constant 0 : index
    %c0_8 = arith.constant 0 : index
    %8 = vector.load %arg5[%c0_7, %c0_8] : memref<1x128xf32, #tpu.memory_space<vmem>>, vector<1x128xf32>
    %9 = vector.broadcast %8 : vector<1x128xf32> to vector<256x128xf32>
    %10 = arith.mulf %7, %9 : vector<256x128xf32>
    %11 = arith.addf %6, %10 : vector<256x128xf32>
    %c0_9 = arith.constant 0 : index
    %c0_10 = arith.constant 0 : index
    %12 = vector.load %arg6[%c0_9, %c0_10] : memref<1x128xf32, #tpu.memory_space<vmem>>, vector<1x128xf32>
    %13 = vector.broadcast %12 : vector<1x128xf32> to vector<256x128xf32>
    %14 = arith.addf %11, %13 : vector<256x128xf32>
    %cst = arith.constant 0.000000e+00 : f32
    %15 = vector.broadcast %cst : f32 to vector<256x128xf32>
    %16 = arith.maximumf %14, %15 : vector<256x128xf32>
    %c0_11 = arith.constant 0 : index
    %c0_12 = arith.constant 0 : index
    %17 = vector.load %arg7[%c0_11, %c0_12] : memref<256x128xf32, #tpu.memory_space<vmem>>, vector<256x128xf32>
    tpu.vector_store %arg7[%c0_11, %c0_12], %16 {strides = array<i32>} : memref<256x128xf32, #tpu.memory_space<vmem>>, vector<256x128xf32>,
    return
  }
  func.func @transform_0(%arg0: i32) -> (i32, i32) {
    %c0_i32 = arith.constant 0 : i32
    %c0_i32_0 = arith.constant 0 : i32
    return %arg0, %c0_i32 : i32, i32
  }
  func.func @transform_1(%arg0: i32) -> (i32, i32) {
    %c0_i32 = arith.constant 0 : i32
    %c0_i32_0 = arith.constant 0 : i32
    return %arg0, %c0_i32 : i32, i32
  }
  func.func @transform_2(%arg0: i32) -> (i32, i32) {
    %c0_i32 = arith.constant 0 : i32
    %c0_i32_0 = arith.constant 0 : i32
    %c0_i32_1 = arith.constant 0 : i32
    return %c0_i32, %c0_i32_0 : i32, i32
  }
  func.func @transform_3(%arg0: i32) -> (i32, i32) {
    %c0_i32 = arith.constant 0 : i32
    %c0_i32_0 = arith.constant 0 : i32
    %c0_i32_1 = arith.constant 0 : i32
    return %c0_i32, %c0_i32_0 : i32, i32
  }
  func.func @transform_4(%arg0: i32) -> (i32, i32) {
    %c0_i32 = arith.constant 0 : i32
    %c0_i32_0 = arith.constant 0 : i32
    %c0_i32_1 = arith.constant 0 : i32
    return %c0_i32, %c0_i32_0 : i32, i32
  }
  func.func @transform_5(%arg0: i32) -> (i32, i32) {
    %c0_i32 = arith.constant 0 : i32
    %c0_i32_0 = arith.constant 0 : i32
    %c0_i32_1 = arith.constant 0 : i32
    return %c0_i32, %c0_i32_0 : i32, i32
  }
  func.func @transform_6(%arg0: i32) -> (i32, i32) {
    %c0_i32 = arith.constant 0 : i32
    %c0_i32_0 = arith.constant 0 : i32
    return %arg0, %c0_i32 : i32, i32
  }
}

module attributes {stable_mosaic.version = 11 : i64} {
  func.func @_conv_pass1_kernel(%arg0: i32, %arg1: i32, %arg2: memref<256x8xbf16, #tpu.memory_space<vmem>>, %arg3: memref<8x128xbf16, #tpu.memory_space<vmem>>, %arg4: memref<256x128xf32, #tpu.memory_space<vmem>>, %arg5: memref<8x128xf32, #tpu.memory_space<vmem>>, %arg6: memref<8x128xf32, #tpu.memory_space<vmem>>, %arg7: memref<256x128xf32, #tpu.memory_space<vmem>>) attributes {dimension_semantics = [#tpu.dimension_semantics<parallel>, #tpu.dimension_semantics<arbitrary>], iteration_bounds = array<i64: 2, 1>, scalar_prefetch = 0 : i64, scratch_operands = 1 : i64, tpu.core_type = #tpu.core_type<tc>, window_params = [{transform_indices = @transform_0, window_bounds = array<i64: 256, 8>}, {transform_indices = @transform_1, window_bounds = array<i64: 8, 128>}, {transform_indices = @transform_2, window_bounds = array<i64: 256, 128>}, {transform_indices = @transform_3, window_bounds = array<i64: 8, 128>}, {transform_indices = @transform_4, window_bounds = array<i64: 8, 128>}]} {
    %c0_i32 = arith.constant 0 : i32
    %0 = arith.cmpi eq, %arg1, %c0_i32 : i32
    %1 = arith.extui %0 : i1 to i32
    %c0_i32_0 = arith.constant 0 : i32
    %2 = arith.cmpi ne, %1, %c0_i32_0 : i32
    scf.if %2 {
      %cst_10 = arith.constant 0.000000e+00 : f32
      %12 = vector.broadcast %cst_10 : f32 to vector<256x128xf32>
      %c0_11 = arith.constant 0 : index
      %c0_12 = arith.constant 0 : index
      %13 = vector.load %arg7[%c0_11, %c0_12] : memref<256x128xf32, #tpu.memory_space<vmem>>, vector<256x128xf32>
      tpu.vector_store %arg7[%c0_11, %c0_12], %12 {strides = array<i32>} : memref<256x128xf32, #tpu.memory_space<vmem>>, vector<256x128xf32>,
    } else {
    }
    %c0 = arith.constant 0 : index
    %c0_1 = arith.constant 0 : index
    %3 = vector.load %arg7[%c0, %c0_1] : memref<256x128xf32, #tpu.memory_space<vmem>>, vector<256x128xf32>
    %c0_2 = arith.constant 0 : index
    %c0_3 = arith.constant 0 : index
    %4 = vector.load %arg2[%c0_2, %c0_3] : memref<256x8xbf16, #tpu.memory_space<vmem>>, vector<256x8xbf16>
    %c0_4 = arith.constant 0 : index
    %c0_5 = arith.constant 0 : index
    %5 = vector.load %arg3[%c0_4, %c0_5] : memref<8x128xbf16, #tpu.memory_space<vmem>>, vector<8x128xbf16>
    %cst = arith.constant dense<0.000000e+00> : vector<256x128xf32>
    %6 = tpu.matmul %4, %5, %cst {dimension_numbers = #tpu.dot_dimension_numbers<[1], [0], [0], [1], [0, 0, 1, 1], [], []>} : vector<256x8xbf16>, vector<8x128xbf16>, vector<256x128xf32> -> vector<256x128xf32>
    %7 = arith.addf %3, %6 : vector<256x128xf32>
    %c0_6 = arith.constant 0 : index
    %c0_7 = arith.constant 0 : index
    %8 = vector.load %arg7[%c0_6, %c0_7] : memref<256x128xf32, #tpu.memory_space<vmem>>, vector<256x128xf32>
    tpu.vector_store %arg7[%c0_6, %c0_7], %7 {strides = array<i32>} : memref<256x128xf32, #tpu.memory_space<vmem>>, vector<256x128xf32>,
    %c0_i32_8 = arith.constant 0 : i32
    %9 = arith.cmpi eq, %arg1, %c0_i32_8 : i32
    %10 = arith.extui %9 : i1 to i32
    %c0_i32_9 = arith.constant 0 : i32
    %11 = arith.cmpi ne, %10, %c0_i32_9 : i32
    scf.if %11 {
      %c0_10 = arith.constant 0 : index
      %c0_11 = arith.constant 0 : index
      %12 = vector.load %arg7[%c0_10, %c0_11] : memref<256x128xf32, #tpu.memory_space<vmem>>, vector<256x128xf32>
      %c0_12 = arith.constant 0 : index
      %c0_13 = arith.constant 0 : index
      %13 = vector.load %arg4[%c0_12, %c0_13] : memref<256x128xf32, #tpu.memory_space<vmem>>, vector<256x128xf32>
      tpu.vector_store %arg4[%c0_12, %c0_13], %12 {strides = array<i32>} : memref<256x128xf32, #tpu.memory_space<vmem>>, vector<256x128xf32>,
      %cst_14 = arith.constant 1.000000e+00 : f32
      %14 = vector.broadcast %cst_14 : f32 to vector<8x256xf32>
      %cst_15 = arith.constant dense<0.000000e+00> : vector<8x128xf32>
      %15 = tpu.matmul %14, %12, %cst_15 {dimension_numbers = #tpu.dot_dimension_numbers<[1], [0], [0], [1], [0, 0, 1, 1], [], []>} : vector<8x256xf32>, vector<256x128xf32>, vector<8x128xf32> -> vector<8x128xf32>
      %c0_16 = arith.constant 0 : index
      %c0_17 = arith.constant 0 : index
      %16 = vector.load %arg5[%c0_16, %c0_17] : memref<8x128xf32, #tpu.memory_space<vmem>>, vector<8x128xf32>
      tpu.vector_store %arg5[%c0_16, %c0_17], %15 {strides = array<i32>} : memref<8x128xf32, #tpu.memory_space<vmem>>, vector<8x128xf32>,
      %17 = arith.mulf %12, %12 : vector<256x128xf32>
      %cst_18 = arith.constant dense<0.000000e+00> : vector<8x128xf32>
      %18 = tpu.matmul %14, %17, %cst_18 {dimension_numbers = #tpu.dot_dimension_numbers<[1], [0], [0], [1], [0, 0, 1, 1], [], []>} : vector<8x256xf32>, vector<256x128xf32>, vector<8x128xf32> -> vector<8x128xf32>
      %c0_19 = arith.constant 0 : index
      %c0_20 = arith.constant 0 : index
      %19 = vector.load %arg6[%c0_19, %c0_20] : memref<8x128xf32, #tpu.memory_space<vmem>>, vector<8x128xf32>
      tpu.vector_store %arg6[%c0_19, %c0_20], %18 {strides = array<i32>} : memref<8x128xf32, #tpu.memory_space<vmem>>, vector<8x128xf32>,
    } else {
    }
    return
  }
  func.func @transform_0(%arg0: i32, %arg1: i32) -> (i32, i32) {
    %c0_i32 = arith.constant 0 : i32
    return %arg0, %arg1 : i32, i32
  }
  func.func @transform_1(%arg0: i32, %arg1: i32) -> (i32, i32) {
    %c0_i32 = arith.constant 0 : i32
    %c0_i32_0 = arith.constant 0 : i32
    return %arg1, %c0_i32 : i32, i32
  }
  func.func @transform_2(%arg0: i32, %arg1: i32) -> (i32, i32) {
    %c0_i32 = arith.constant 0 : i32
    %c0_i32_0 = arith.constant 0 : i32
    return %arg0, %c0_i32 : i32, i32
  }
  func.func @transform_3(%arg0: i32, %arg1: i32) -> (i32, i32) {
    %c0_i32 = arith.constant 0 : i32
    %c0_i32_0 = arith.constant 0 : i32
    return %arg0, %c0_i32 : i32, i32
  }
  func.func @transform_4(%arg0: i32, %arg1: i32) -> (i32, i32) {
    %c0_i32 = arith.constant 0 : i32
    %c0_i32_0 = arith.constant 0 : i32
    return %arg0, %c0_i32 : i32, i32
  }
}

</mosaic_0001>

<bundles_post_ra>
// kernel: res_conv_block_with_bn.6
= control target key start
LH: loop header
LB: loop body
LE: loop exit
PB: predicated region body
PF: predicated region fallthrough
CT: control target
= control target key end

     0   :  { %s740_s12 = smov 0   ;;  %s887_s0 = inlined_call_operand.vmem [shape: f32[512,128], index: 0, kind: input, shape index: {}]   ;;  %s888_s1 = inlined_call_operand.vmem [shape: f32[1,128], index: 1, kind: input, shape index: {}]   ;;  %s889_s2 = inlined_call_operand.vmem [shape: f32[1,128], index: 2, kind: input, shape index: {}]   ;;  %s890_s3 = inlined_call_operand.vmem [shape: bf16[512,128], index: 3, kind: output, shape index: {}]  }
   0x1 LB: > { %s532_s13 = sadd.s32 4294967295, %s718_s12   ;;  %p536_p0 = scmp.ge.s32.totalorder %s718_s12, 1  ;;  %s718_s12 = sphi %s740_s12, %s13_s12  }
   0x2   : > { %p138_p1 = scmp.lt.s32.totalorder %s718_s12, 3 }
   0x4   : > { %p139_p2 = pnand %p536_p0, %p138_p1 }
   0x5   : > { %s537_s14 = sshll.u32 (!%p139_p2), %s532_s13, 5  ;;  %v754_v0 = vld [vmem:[%s888_s1] ss:$0 sm:$0xff] (!%p139_p2) }
   0x6   : > { %142 = sbr.rel (%p139_p2) target bundleno = 51 (0x33), region = 32  ;;  %p163_p3 = scmp.lt.s32.totalorder (!%p139_p2), %s537_s14, 63  ;;  %v764_v1 = vld [vmem:[%s889_s2] ss:$0 sm:$0xff] (!%p139_p2) }
   0xd   : > { %s892_s14 = smov (!%p163_p3, %s537_s14), 63 }
   0xe   : > { %s538_s15 = sshll.u32 %s892_s14, 3  ;;  %s540_s23 = sshll.u32 %s892_s14, 2 }
   0xf   : > { %s759_s20 = scalar_lea.vmem %s887_s0, %s538_s15  ;;  %s796_s26 = scalar_lea.vmem %s890_s3, %s540_s23 }
  0x10   : > { %v174_v2 = vld [vmem:[%s759_s20] sm:$0xff]  ;;  %v175_v3 = vld [vmem:[%s759_s20 + $0x8] sm:$0xff]  ;;  %v176_v4 = vld [vmem:[%s759_s20 + $0x10] sm:$0xff] }
  0x11   : > { %v213_v5 = vmul.f32 %v754_v0, %v174_v2  ;;  %v214_v6 = vmul.f32 %v754_v0, %v175_v3  ;;  %v177_v7 = vld [vmem:[%s759_s20 + $0x18] sm:$0xff]  ;;  %v215_v8 = vmul.f32 %v754_v0, %v176_v4  ;;  %v178_v9 = vld [vmem:[%s759_s20 + $0x20] sm:$0xff]  ;;  %v179_v10 = vld [vmem:[%s759_s20 + $0x28] sm:$0xff] }
  0x12   : > { %v216_v11 = vmul.f32 %v754_v0, %v177_v7  ;;  %v217_v12 = vmul.f32 %v754_v0, %v178_v9  ;;  %v218_v13 = vmul.f32 %v754_v0, %v179_v10  ;;  %v180_v14 = vld [vmem:[%s759_s20 + $0x30] sm:$0xff]  ;;  %v181_v15 = vld [vmem:[%s759_s20 + $0x38] sm:$0xff]  ;;  %v182_v24 = vld [vmem:[%s759_s20 + $0x40] sm:$0xff] }
  0x13   : > { %v252_v16 = vadd.f32 %v764_v1, %v213_v5  ;;  %v253_v17 = vadd.f32 %v764_v1, %v214_v6  ;;  %v254_v18 = vadd.f32 %v764_v1, %v215_v8  ;;  %v219_v19 = vmul.f32 %v754_v0, %v180_v14  ;;  %v183_v25 = vld [vmem:[%s759_s20 + $0x48] sm:$0xff]  ;;  %v184_v30 = vld [vmem:[%s759_s20 + $0x50] sm:$0xff]  ;;  %v185_v35 = vld [vmem:[%s759_s20 + $0x58] sm:$0xff] }
  0x14   : > { %v255_v20 = vadd.f32 %v764_v1, %v216_v11  ;;  %v256_v21 = vadd.f32 %v764_v1, %v217_v12  ;;  %v257_v22 = vadd.f32 %v764_v1, %v218_v13  ;;  %v220_v23 = vmul.f32 %v754_v0, %v181_v15  ;;  %v186_v36 = vld [vmem:[%s759_s20 + $0x60] sm:$0xff]  ;;  %v187_v41 = vld [vmem:[%s759_s20 + $0x68] sm:$0xff]  ;;  %v188_v42 = vld [vmem:[%s759_s20 + $0x70] sm:$0xff] }
  0x15   : > { %v284_v26 = vmax.f32 %v252_v16, 0.0  ;;  %v285_v27 = vmax.f32 %v253_v17, 0.0  ;;  %v286_v28 = vmax.f32 %v254_v18, 0.0  ;;  %v258_v29 = vadd.f32 %v764_v1, %v219_v19  ;;  %v189_v51 = vld [vmem:[%s759_s20 + $0x78] sm:$0xff]  ;;  %v190_v56 = vld [vmem:[%s759_s20 + $0x80] sm:$0xff]  ;;  %v191_v61 = vld [vmem:[%s759_s20 + $0x88] sm:$0xff] }
  0x16   : > { %v287_v31 = vmax.f32 %v255_v20, 0.0  ;;  %v288_v32 = vmax.f32 %v256_v21, 0.0  ;;  %v289_v33 = vmax.f32 %v257_v22, 0.0  ;;  %v259_v34 = vadd.f32 %v764_v1, %v220_v23  ;;  %v192_v4 = vld [vmem:[%s759_s20 + $0x90] sm:$0xff]  ;;  %v193_v5 = vld [vmem:[%s759_s20 + $0x98] sm:$0xff]  ;;  %v194_v10 = vld [vmem:[%s759_s20 + $0xa0] sm:$0xff] }
  0x17   : > { %v612_v37 = vpack.c.bf16 %v285_v27, %v284_v26  ;;  %v290_v38 = vmax.f32 %v258_v29, 0.0  ;;  %v221_v39 = vmul.f32 %v754_v0, %v182_v24  ;;  %v222_v40 = vmul.f32 %v754_v0, %v183_v25  ;;  %v195_v15 = vld [vmem:[%s759_s20 + $0xa8] sm:$0xff]  ;;  %v196_v20 = vld [vmem:[%s759_s20 + $0xb0] sm:$0xff]  ;;  %v197_v25 = vld [vmem:[%s759_s20 + $0xb8] sm:$0xff] }
  0x18   : > { %v617_v43 = vpack.c.bf16 %v287_v31, %v286_v28  ;;  %v622_v44 = vpack.c.bf16 %v289_v33, %v288_v32  ;;  %v291_v45 = vmax.f32 %v259_v34, 0.0  ;;  %v223_v46 = vmul.f32 %v754_v0, %v184_v30  ;;  %v198_v30 = vld [vmem:[%s759_s20 + $0xc0] sm:$0xff] }
  0x19   : > { %613 = vst [vmem:[%s796_s26] sm:$0xff] %v612_v37   ;;  %v260_v47 = vadd.f32 %v764_v1, %v221_v39  ;;  %v261_v48 = vadd.f32 %v764_v1, %v222_v40  ;;  %v224_v49 = vmul.f32 %v754_v0, %v185_v35  ;;  %v225_v50 = vmul.f32 %v754_v0, %v186_v36  ;;  %v199_v35 = vld [vmem:[%s759_s20 + $0xc8] sm:$0xff]  ;;  %v200_v40 = vld [vmem:[%s759_s20 + $0xd0] sm:$0xff] }
  0x1a   : > { %689 = vst [vmem:[%s796_s26 + $0x8] sm:$0xff] %v617_v43   ;;  %690 = vst [vmem:[%s796_s26 + $0x10] sm:$0xff] %v622_v44   ;;  %v627_v52 = vpack.c.bf16 %v291_v45, %v290_v38  ;;  %v262_v53 = vadd.f32 %v764_v1, %v223_v46  ;;  %v226_v54 = vmul.f32 %v754_v0, %v187_v41  ;;  %v201_v41 = vld [vmem:[%s759_s20 + $0xd8] sm:$0xff]  ;;  %v202_v46 = vld [vmem:[%s759_s20 + $0xe0] sm:$0xff] }
  0x1b   : > { %v227_v55 = vmul.f32 %v754_v0, %v188_v42  ;;  %v292_v57 = vmax.f32 %v260_v47, 0.0  ;;  %v293_v58 = vmax.f32 %v261_v48, 0.0  ;;  %v263_v59 = vadd.f32 %v764_v1, %v224_v49 }
  0x1c   : > { %v264_v60 = vadd.f32 %v764_v1, %v225_v50  ;;  %691 = vst [vmem:[%s796_s26 + $0x18] sm:$0xff] %v627_v52   ;;  %v294_v62 = vmax.f32 %v262_v53, 0.0  ;;  %v265_v63 = vadd.f32 %v764_v1, %v226_v54  ;;  %v228_v2 = vmul.f32 %v754_v0, %v189_v51  ;;  %v203_v51 = vld [vmem:[%s759_s20 + $0xe8] sm:$0xff] }
  0x1d   : > { %v266_v3 = vadd.f32 %v764_v1, %v227_v55  ;;  %v632_v6 = vpack.c.bf16 %v293_v58, %v292_v57  ;;  %v295_v7 = vmax.f32 %v263_v59, 0.0  ;;  %v229_v9 = vmul.f32 %v754_v0, %v190_v56  ;;  %v204_v56 = vld [vmem:[%s759_s20 + $0xf0] sm:$0xff] }
  0x1e   : > { %v296_v8 = vmax.f32 %v264_v60, 0.0  ;;  %v297_v11 = vmax.f32 %v265_v63, 0.0  ;;  %v267_v12 = vadd.f32 %v764_v1, %v228_v2  ;;  %v230_v14 = vmul.f32 %v754_v0, %v191_v61  ;;  %v205_v61 = vld [vmem:[%s759_s20 + $0xf8] sm:$0xff] }
  0x1f   : > { %v298_v13 = vmax.f32 %v266_v3, 0.0  ;;  %692 = vst [vmem:[%s796_s26 + $0x20] sm:$0xff] %v632_v6   ;;  %v637_v16 = vpack.c.bf16 %v295_v7, %v294_v62  ;;  %v268_v17 = vadd.f32 %v764_v1, %v229_v9  ;;  %v231_v18 = vmul.f32 %v754_v0, %v192_v4 }
  0x20   : > { %v232_v19 = vmul.f32 %v754_v0, %v193_v5  ;;  %v642_v21 = vpack.c.bf16 %v297_v11, %v296_v8  ;;  %v299_v22 = vmax.f32 %v267_v12, 0.0  ;;  %v269_v23 = vadd.f32 %v764_v1, %v230_v14 }
  0x21   : > { %v233_v24 = vmul.f32 %v754_v0, %v194_v10  ;;  %693 = vst [vmem:[%s796_s26 + $0x28] sm:$0xff] %v637_v16   ;;  %v300_v26 = vmax.f32 %v268_v17, 0.0  ;;  %v270_v27 = vadd.f32 %v764_v1, %v231_v18  ;;  %v234_v29 = vmul.f32 %v754_v0, %v195_v15 }
  0x22   : > { %v271_v28 = vadd.f32 %v764_v1, %v232_v19  ;;  %694 = vst [vmem:[%s796_s26 + $0x30] sm:$0xff] %v642_v21   ;;  %v647_v31 = vpack.c.bf16 %v299_v22, %v298_v13  ;;  %v301_v32 = vmax.f32 %v269_v23, 0.0  ;;  %v235_v34 = vmul.f32 %v754_v0, %v196_v20 }
  0x23   : > { %v272_v33 = vadd.f32 %v764_v1, %v233_v24  ;;  %v302_v36 = vmax.f32 %v270_v27, 0.0  ;;  %v273_v38 = vadd.f32 %v764_v1, %v234_v29  ;;  %v236_v39 = vmul.f32 %v754_v0, %v197_v25 }
  0x24   : > { %v303_v37 = vmax.f32 %v271_v28, 0.0  ;;  %695 = vst [vmem:[%s796_s26 + $0x38] sm:$0xff] %v647_v31   ;;  %v652_v42 = vpack.c.bf16 %v301_v32, %v300_v26  ;;  %v274_v44 = vadd.f32 %v764_v1, %v235_v34  ;;  %v237_v45 = vmul.f32 %v754_v0, %v198_v30 }
  0x25   : > { %v304_v43 = vmax.f32 %v272_v33, 0.0  ;;  %v305_v48 = vmax.f32 %v273_v38, 0.0  ;;  %v275_v49 = vadd.f32 %v764_v1, %v236_v39  ;;  %v238_v50 = vmul.f32 %v754_v0, %v199_v35 }
  0x26   : > { %v657_v47 = vpack.c.bf16 %v303_v37, %v302_v36  ;;  %696 = vst [vmem:[%s796_s26 + $0x40] sm:$0xff] %v652_v42   ;;  %v306_v52 = vmax.f32 %v274_v44, 0.0  ;;  %v276_v53 = vadd.f32 %v764_v1, %v237_v45  ;;  %v239_v54 = vmul.f32 %v754_v0, %v200_v40 }
  0x27   : > { %v240_v55 = vmul.f32 %v754_v0, %v201_v41  ;;  %v662_v57 = vpack.c.bf16 %v305_v48, %v304_v43  ;;  %v307_v58 = vmax.f32 %v275_v49, 0.0  ;;  %v277_v59 = vadd.f32 %v764_v1, %v238_v50 }
  0x28   : > { %697 = vst [vmem:[%s796_s26 + $0x48] sm:$0xff] %v657_v47   ;;  %v241_v60 = vmul.f32 %v754_v0, %v202_v46  ;;  %v308_v62 = vmax.f32 %v276_v53, 0.0  ;;  %v278_v63 = vadd.f32 %v764_v1, %v239_v54  ;;  %v242_v3 = vmul.f32 %v754_v0, %v203_v51 }
  0x29   : > { %v279_v2 = vadd.f32 %v764_v1, %v240_v55  ;;  %698 = vst [vmem:[%s796_s26 + $0x50] sm:$0xff] %v662_v57   ;;  %v667_v4 = vpack.c.bf16 %v307_v58, %v306_v52  ;;  %v309_v5 = vmax.f32 %v277_v59, 0.0  ;;  %v243_v7 = vmul.f32 %v754_v0, %v204_v56 }
  0x2a   : > { %v280_v6 = vadd.f32 %v764_v1, %v241_v60  ;;  %v310_v8 = vmax.f32 %v278_v63, 0.0  ;;  %v281_v10 = vadd.f32 %v764_v1, %v242_v3  ;;  %v244_v11 = vmul.f32 %v754_v0, %v205_v61 }
  0x2b   : > { %v311_v9 = vmax.f32 %v279_v2, 0.0  ;;  %699 = vst [vmem:[%s796_s26 + $0x58] sm:$0xff] %v667_v4   ;;  %v672_v12 = vpack.c.bf16 %v309_v5, %v308_v62  ;;  %v282_v14 = vadd.f32 %v764_v1, %v243_v7 }
  0x2c   : > { %v312_v13 = vmax.f32 %v280_v6, 0.0  ;;  %v313_v16 = vmax.f32 %v281_v10, 0.0  ;;  %v283_v17 = vadd.f32 %v764_v1, %v244_v11 }
  0x2d   : > { %v677_v15 = vpack.c.bf16 %v311_v9, %v310_v8  ;;  %700 = vst [vmem:[%s796_s26 + $0x60] sm:$0xff] %v672_v12   ;;  %v314_v18 = vmax.f32 %v282_v14, 0.0 }
  0x2e   : > { %v682_v19 = vpack.c.bf16 %v313_v16, %v312_v13  ;;  %v315_v20 = vmax.f32 %v283_v17, 0.0 }
  0x2f   : > { %701 = vst [vmem:[%s796_s26 + $0x68] sm:$0xff] %v677_v15  }
  0x30   : > { %702 = vst [vmem:[%s796_s26 + $0x70] sm:$0xff] %v682_v19   ;;  %v687_v21 = vpack.c.bf16 %v315_v20, %v314_v18 }
  0x32   : > { %703 = vst [vmem:[%s796_s26 + $0x78] sm:$0xff] %v687_v21  }
  0x33 PF: > { %s13_s12 = sadd.s32 1, %s718_s12  }
  0x34   : > { %p10_p4 = scmp.ge.s32.totalorder %s13_s12, 4  }
  0x36   :  { %12 = sbr.rel (!%p10_p4) target bundleno = 1 (0x1), region = 62 }

// kernel: res_conv_block_with_bn.5
= control target key start
LH: loop header
LB: loop body
LE: loop exit
PB: predicated region body
PF: predicated region fallthrough
CT: control target
= control target key end

     0   :  { %s1467_s15 = smov 0   ;;  %s1469_s16 = smov 0   ;;  %s1809_s0 = inlined_call_operand.vmem [shape: bf16[512,40], index: 0, kind: input, shape index: {}]   ;;  %s1810_s1 = inlined_call_operand.vmem [shape: bf16[40,128], index: 1, kind: input, shape index: {}]   ;;  %s1811_s2 = inlined_call_operand.vmem [shape: f32[512,128], index: 2, kind: output, shape index: {0}]   ;;  %s1812_s3 = inlined_call_operand.vmem [shape: f32[16,128], index: 3, kind: output, shape index: {1}]   ;;  %s1813_s4 = inlined_call_operand.vmem [shape: f32[16,128], index: 4, kind: output, shape index: {2}]  }
   0x1   :  { %s1471_s17 = smov 0  }
   0x2 LB: > { %s27_s18 = sadd.s32 1, %s1435_s16  ;;  %p1137_p0 = scmp.ge.s32.totalorder %s1439_s17, 1  ;;  %s1439_s17 = sphi %s1471_s17, %s15_s17   ;;  %s1435_s16 = sphi %s1469_s16, %s1815_s16   ;;  %s1431_s15 = sphi %s1467_s15, %s1814_s15  }
   0x3   : > { %p29_p1 = scmp.ge.s32.totalorder %s27_s18, 2  ;;  %p196_p2 = scmp.lt.s32.totalorder %s1439_s17, 3 }
   0x5   : > { %s1817_s18 = smov (%p29_p1, %s27_s18), 0  ;;  %p197_p3 = pnand %p1137_p0, %p196_p2 }
   0x6   : > { %v1398_v0 = vld [vmem:[%s1810_s1] sm:$0xff] (!%p197_p3)   ;;  %v1399_v1 = vld [vmem:[%s1810_s1 + $0x8] sm:$0xff] (!%p197_p3)   ;;  %s1138_s23 = sshll.u32 (!%p197_p3), %s1431_s15, 5  ;;  %v1400_v2 = vld [vmem:[%s1810_s1 + $0x10] ss:$0 sps:$4 sm:$0xff] (!%p197_p3)   ;;  %vm517_vm0 = vcmask (!%p197_p3), 1043456  }
   0x7   : > { %200 = sbr.rel (%p197_p3) target bundleno = 548 (0x224), region = 28  ;;  %1270 = vmatprep.subr.bf16.mxu0 (!%p197_p3), %v1398_v0  ;;  %p239_p4 = scmp.lt.s32.totalorder (!%p197_p3), %s1138_s23, 63  ;;  %vm468_vm1 = vcmask (!%p197_p3), 326656   ;;  %v519_v3 = vsel (!%p197_p3), %vm517_vm0, %v1400_v2, 0  ;;  %v1441_v20 = vmov (!%p197_p3), 1.0  }
   0x8   : > { %1271 = vmatpush3.bf16.msra.mxu0 (!%p197_p3), %v1398_v0  ;;  %877 = vmatprep.mubr.f32.mxu1 (!%p197_p3), %v1441_v20  ;;  %p259_p5 = scmp.lt.s32.totalorder (!%p197_p3), %s1431_s15, 1 }
   0x9   : > { %1272 = vmatprep.subr.bf16.mxu0 (!%p197_p3), %v1399_v1 }
   0xc   : > { %1273 = vmatpush3.bf16.msra.mxu0 (!%p197_p3), %v1399_v1 }
   0xd   : > { %1372 = vmatprep.subr.msk.bf16.mxu0 (!%p197_p3), %vm517_vm0, %v1400_v2 }
   0xe   : > { %s1819_s23 = smov (!%p239_p4, %s1138_s23), 63  ;;  %s1821_s15 = smov (!%p259_p5, %s1431_s15), 1 }
   0xf   : > { %s1139_s26 = sshll.u32 %s1819_s23, 2  ;;  %s1141_s30 = sshll.u32 %s1819_s23, 3 }
  0x10   : > { %s1503_s29 = scalar_lea.vmem %s1809_s0, %s1139_s26  ;;  %1275 = vmatpush3.bf16.msra.mxu0 %v519_v3  ;;  %s1542_s7 = scalar_lea.vmem %s1811_s2, %s1141_s30 }
  0x11   : > { %v1401_v4 = vld [vmem:[%s1503_s29] sm:$0xff]   ;;  %v1402_v5 = vld [vmem:[%s1503_s29 + $0x8] sm:$0xff]   ;;  %v1403_v6 = vld [vmem:[%s1503_s29 + $0x10] sm:$0xff]   ;;  %s1142_s8 = sshll.u32 %s1821_s15, 3 }
  0x12   : > { %1276 = vmatprep.mubr.msk.bf16.mxu0 %vm468_vm1, %v1401_v4  ;;  %v1404_v7 = vld [vmem:[%s1503_s29 + $0x18] sm:$0xff]   ;;  %v1405_v8 = vld [vmem:[%s1503_s29 + $0x20] sm:$0xff]   ;;  %v1406_v9 = vld [vmem:[%s1503_s29 + $0x28] sm:$0xff]   ;;  %s262_s11 = scalar_lea.vmem %s1812_s3, %s1142_s8  ;;  %s266_s14 = scalar_lea.vmem %s1813_s4, %s1142_s8 }
  0x13   : > { %1277 = vmatmul.mubr.msk.bf16.vlgmr.msra.gmra.mrb[0].mxu0 %vm468_vm1, %v1402_v5  ;;  %v1407_v10 = vld [vmem:[%s1503_s29 + $0x30] sm:$0xff]   ;;  %v1408_v11 = vld [vmem:[%s1503_s29 + $0x38] sm:$0xff]   ;;  %v1409_v12 = vld [vmem:[%s1503_s29 + $0x40] sm:$0xff]  }
  0x14   : > { %1280 = vmatprep.mubr.msk.bf16.mxu0 %vm468_vm1, %v1403_v6  ;;  %v1410_v13 = vld [vmem:[%s1503_s29 + $0x48] sm:$0xff]   ;;  %v1411_v14 = vld [vmem:[%s1503_s29 + $0x50] sm:$0xff]   ;;  %v1412_v15 = vld [vmem:[%s1503_s29 + $0x58] sm:$0xff]  }
  0x15   : > { %v1413_v16 = vld [vmem:[%s1503_s29 + $0x60] sm:$0xff]   ;;  %v1414_v17 = vld [vmem:[%s1503_s29 + $0x68] sm:$0xff]   ;;  %v1415_v18 = vld [vmem:[%s1503_s29 + $0x70] sm:$0xff]  }
  0x16   : > { %v1416_v19 = vld [vmem:[%s1503_s29 + $0x78] sm:$0xff]  }
  0x1b   : > { %1281 = vmatmul.mubr.msk.bf16.gmra.mrb[4].mxu0 %vm468_vm1, %v1404_v7 }
  0x1c   : > { %1284 = vmatprep.mubr.msk.bf16.mxu0 %vm468_vm1, %v1405_v8 }
  0x23   : > { %1285 = vmatmul.mubr.msk.bf16.gmra.mrb[8].mxu0 %vm468_vm1, %v1406_v9 }
  0x24   : > { %1288 = vmatprep.mubr.msk.bf16.mxu0 %vm468_vm1, %v1407_v10 }
  0x2b   : > { %1289 = vmatmul.mubr.msk.bf16.gmra.mrb[12].mxu0 %vm468_vm1, %v1408_v11 }
  0x2c   : > { %1292 = vmatprep.mubr.msk.bf16.mxu0 %vm468_vm1, %v1409_v12 }
  0x33   : > { %1293 = vmatmul.mubr.msk.bf16.gmra.mrb[16].mxu0 %vm468_vm1, %v1410_v13 }
  0x34   : > { %1296 = vmatprep.mubr.msk.bf16.mxu0 %vm468_vm1, %v1411_v14 }
  0x3b   : > { %1297 = vmatmul.mubr.msk.bf16.gmra.mrb[20].mxu0 %vm468_vm1, %v1412_v15 }
  0x3c   : > { %1300 = vmatprep.mubr.msk.bf16.mxu0 %vm468_vm1, %v1413_v16 }
  0x43   : > { %1301 = vmatmul.mubr.msk.bf16.gmra.mrb[24].mxu0 %vm468_vm1, %v1414_v17 }
  0x44   : > { %1304 = vmatprep.mubr.msk.bf16.mxu0 %vm468_vm1, %v1415_v18 }
  0x4b   : > { %1305 = vmatmul.mubr.msk.bf16.gmra.mrb[28].mxu0 %vm468_vm1, %v1416_v19 }
  0xe6   : > { %v1544_v21 = vpop.f32.mrb[0].mxu0 }
  0xe7   : > { %783 = vst [vmem:[%s1542_s7 + $0x10] sm:$0xff] %v1544_v21  ;;  %v1548_v22 = vpop.f32.mrb[1].mxu0  ;;  %v1556_v24 = vmul.f32 %v1544_v21, %v1544_v21 }
  0xe8   : > { %781 = vst [vmem:[%s1542_s7] sm:$0xff] %v1548_v22  ;;  %v1552_v23 = vpop.f32.mrb[2].mxu0  ;;  %v1570_v28 = vmul.f32 %v1548_v22, %v1548_v22 }
  0xe9   : > { %784 = vst [vmem:[%s1542_s7 + $0x18] sm:$0xff] %v1552_v23  ;;  %v1314_v25 = vpack.c.bf16 %v1552_v23, %v1544_v21  ;;  %v1564_v26 = vmul.f32 %v1552_v23, %v1552_v23  ;;  %v1566_v27 = vpop.f32.mrb[3].mxu0 }
  0xea   : > { %782 = vst [vmem:[%s1542_s7 + $0x8] sm:$0xff] %v1566_v27  ;;  %v1576_v29 = vmul.f32 %v1566_v27, %v1566_v27  ;;  %v1310_v30 = vpack.c.bf16 %v1566_v27, %v1548_v22 }
  0xeb   : > { %v1346_v31 = vpack.c.bf16 %v1564_v26, %v1556_v24 }
  0xec   : > { %v1342_v32 = vpack.c.bf16 %v1576_v29, %v1570_v28 }
  0xee   : > { %v1584_v33 = vpop.f32.mrb[4].mxu0 }
  0xef   : > { %787 = vst [vmem:[%s1542_s7 + $0x30] sm:$0xff] %v1584_v33  ;;  %v1588_v34 = vpop.f32.mrb[5].mxu0  ;;  %v1596_v36 = vmul.f32 %v1584_v33, %v1584_v33 }
  0xf0   : > { %785 = vst [vmem:[%s1542_s7 + $0x20] sm:$0xff] %v1588_v34  ;;  %v1592_v35 = vpop.f32.mrb[6].mxu0  ;;  %v1610_v40 = vmul.f32 %v1588_v34, %v1588_v34 }
  0xf1   : > { %788 = vst [vmem:[%s1542_s7 + $0x38] sm:$0xff] %v1592_v35  ;;  %v1322_v37 = vpack.c.bf16 %v1592_v35, %v1584_v33  ;;  %v1604_v38 = vmul.f32 %v1592_v35, %v1592_v35  ;;  %v1606_v39 = vpop.f32.mrb[7].mxu0 }
  0xf2   : > { %786 = vst [vmem:[%s1542_s7 + $0x28] sm:$0xff] %v1606_v39  ;;  %v1318_v41 = vpack.c.bf16 %v1606_v39, %v1588_v34  ;;  %v1618_v42 = vmul.f32 %v1606_v39, %v1606_v39 }
  0xf3   : > { %v1354_v43 = vpack.c.bf16 %v1604_v38, %v1596_v36 }
  0xf4   : > { %v1350_v44 = vpack.c.bf16 %v1618_v42, %v1610_v40 }
  0xf6   : > { %v1624_v45 = vpop.f32.mrb[8].mxu0 }
  0xf7   : > { %791 = vst [vmem:[%s1542_s7 + $0x50] sm:$0xff] %v1624_v45  ;;  %v1628_v46 = vpop.f32.mrb[9].mxu0  ;;  %v1636_v48 = vmul.f32 %v1624_v45, %v1624_v45 }
  0xf8   : > { %789 = vst [vmem:[%s1542_s7 + $0x40] sm:$0xff] %v1628_v46  ;;  %v1632_v47 = vpop.f32.mrb[10].mxu0  ;;  %v1650_v52 = vmul.f32 %v1628_v46, %v1628_v46 }
  0xf9   : > { %792 = vst [vmem:[%s1542_s7 + $0x58] sm:$0xff] %v1632_v47  ;;  %v1330_v49 = vpack.c.bf16 %v1632_v47, %v1624_v45  ;;  %v1644_v50 = vmul.f32 %v1632_v47, %v1632_v47  ;;  %v1646_v51 = vpop.f32.mrb[11].mxu0 }
  0xfa   : > { %790 = vst [vmem:[%s1542_s7 + $0x48] sm:$0xff] %v1646_v51  ;;  %v1326_v53 = vpack.c.bf16 %v1646_v51, %v1628_v46  ;;  %v1658_v54 = vmul.f32 %v1646_v51, %v1646_v51 }
  0xfb   : > { %v1362_v55 = vpack.c.bf16 %v1644_v50, %v1636_v48 }
  0xfc   : > { %v1358_v56 = vpack.c.bf16 %v1658_v54, %v1650_v52 }
  0xfe   : > { %v1664_v57 = vpop.f32.mrb[12].mxu0 }
  0xff   : > { %795 = vst [vmem:[%s1542_s7 + $0x70] sm:$0xff] %v1664_v57  ;;  %v1668_v58 = vpop.f32.mrb[13].mxu0  ;;  %v1676_v60 = vmul.f32 %v1664_v57, %v1664_v57 }
 0x100   : > { %793 = vst [vmem:[%s1542_s7 + $0x60] sm:$0xff] %v1668_v58  ;;  %v1672_v59 = vpop.f32.mrb[14].mxu0  ;;  %v1690_v0 = vmul.f32 %v1668_v58, %v1668_v58 }
 0x101   : > { %796 = vst [vmem:[%s1542_s7 + $0x78] sm:$0xff] %v1672_v59  ;;  %v1338_v61 = vpack.c.bf16 %v1672_v59, %v1664_v57  ;;  %v1684_v62 = vmul.f32 %v1672_v59, %v1672_v59  ;;  %v1686_v63 = vpop.f32.mrb[15].mxu0 }
 0x102   : > { %794 = vst [vmem:[%s1542_s7 + $0x68] sm:$0xff] %v1686_v63  ;;  %v1334_v1 = vpack.c.bf16 %v1686_v63, %v1668_v58  ;;  %v1698_v2 = vmul.f32 %v1686_v63, %v1686_v63 }
 0x103   : > { %v1370_v3 = vpack.c.bf16 %v1684_v62, %v1676_v60 }
 0x104   : > { %v1366_v4 = vpack.c.bf16 %v1698_v2, %v1690_v0 }
 0x106   : > { %v1294_v5 = vpop.f32.mrb[16].mxu0 }
 0x107   : > { %799 = vst [vmem:[%s1542_s7 + $0x90] sm:$0xff] %v1294_v5  ;;  %v619_v6 = vpop.f32.mrb[17].mxu0  ;;  %v1706_v8 = vmul.f32 %v1294_v5, %v1294_v5 }
 0x108   : > { %797 = vst [vmem:[%s1542_s7 + $0x80] sm:$0xff] %v619_v6  ;;  %v1295_v7 = vpop.f32.mrb[18].mxu0  ;;  %v1711_v12 = vmul.f32 %v619_v6, %v619_v6 }
 0x109   : > { %800 = vst [vmem:[%s1542_s7 + $0x98] sm:$0xff] %v1295_v7  ;;  %v1312_v9 = vpack.c.bf16 %v1295_v7, %v1294_v5  ;;  %v1709_v10 = vmul.f32 %v1295_v7, %v1295_v7  ;;  %v622_v11 = vpop.f32.mrb[19].mxu0 }
 0x10a   : > { %798 = vst [vmem:[%s1542_s7 + $0x88] sm:$0xff] %v622_v11  ;;  %v1714_v13 = vmul.f32 %v622_v11, %v622_v11  ;;  %v1308_v14 = vpack.c.bf16 %v622_v11, %v619_v6 }
 0x10b   : > { %v1344_v15 = vpack.c.bf16 %v1709_v10, %v1706_v8 }
 0x10c   : > { %1309 = vmatprep.subr.bf16.mxu1 %v1308_v14  ;;  %v1340_v16 = vpack.c.bf16 %v1714_v13, %v1711_v12 }
 0x10d   : > { %1311 = vmatpush3.bf16.msra.mxu1 %v1310_v30 }
 0x10e   : > { %v1298_v17 = vpop.f32.mrb[20].mxu0  ;;  %1313 = vmatprep.subr.bf16.mxu1 %v1312_v9 }
 0x10f   : > { %803 = vst [vmem:[%s1542_s7 + $0xb0] sm:$0xff] %v1298_v17  ;;  %v635_v18 = vpop.f32.mrb[21].mxu0  ;;  %v1725_v5 = vmul.f32 %v1298_v17, %v1298_v17 }
 0x110   : > { %801 = vst [vmem:[%s1542_s7 + $0xa0] sm:$0xff] %v635_v18  ;;  %v1299_v19 = vpop.f32.mrb[22].mxu0  ;;  %v904_v22 = vmul.f32 %v635_v18, %v635_v18 }
 0x111   : > { %804 = vst [vmem:[%s1542_s7 + $0xb8] sm:$0xff] %v1299_v19  ;;  %v1320_v6 = vpack.c.bf16 %v1299_v19, %v1298_v17  ;;  %v907_v7 = vmul.f32 %v1299_v19, %v1299_v19  ;;  %v638_v11 = vpop.f32.mrb[23].mxu0  ;;  %1315 = vmatpush3.bf16.msra.mxu1 %v1314_v25 }
 0x112   : > { %802 = vst [vmem:[%s1542_s7 + $0xa8] sm:$0xff] %v638_v11  ;;  %v1316_v27 = vpack.c.bf16 %v638_v11, %v635_v18  ;;  %v905_v30 = vmul.f32 %v638_v11, %v638_v11 }
 0x113   : > { %v1352_v9 = vpack.c.bf16 %v907_v7, %v1725_v5 }
 0x114   : > { %1317 = vmatprep.subr.bf16.mxu1 %v1316_v27  ;;  %v1348_v14 = vpack.c.bf16 %v905_v30, %v904_v22 }
 0x115   : > { %1319 = vmatpush3.bf16.msra.mxu1 %v1318_v41 }
 0x116   : > { %v1302_v17 = vpop.f32.mrb[24].mxu0  ;;  %1321 = vmatprep.subr.bf16.mxu1 %v1320_v6 }
 0x117   : > { %807 = vst [vmem:[%s1542_s7 + $0xd0] sm:$0xff] %v1302_v17  ;;  %v651_v19 = vpop.f32.mrb[25].mxu0  ;;  %v910_v23 = vmul.f32 %v1302_v17, %v1302_v17 }
 0x118   : > { %805 = vst [vmem:[%s1542_s7 + $0xc0] sm:$0xff] %v651_v19  ;;  %v1303_v21 = vpop.f32.mrb[26].mxu0  ;;  %v908_v34 = vmul.f32 %v651_v19, %v651_v19 }
 0x119   : > { %808 = vst [vmem:[%s1542_s7 + $0xd8] sm:$0xff] %v1303_v21  ;;  %v1328_v25 = vpack.c.bf16 %v1303_v21, %v1302_v17  ;;  %v911_v18 = vmul.f32 %v1303_v21, %v1303_v21  ;;  %v654_v5 = vpop.f32.mrb[27].mxu0  ;;  %1323 = vmatpush3.bf16.msra.mxu1 %v1322_v37 }
 0x11a   : > { %806 = vst [vmem:[%s1542_s7 + $0xc8] sm:$0xff] %v654_v5  ;;  %v1324_v39 = vpack.c.bf16 %v654_v5, %v651_v19  ;;  %v909_v41 = vmul.f32 %v654_v5, %v654_v5 }
 0x11b   : > { %v1360_v6 = vpack.c.bf16 %v911_v18, %v910_v23 }
 0x11c   : > { %1325 = vmatprep.subr.bf16.mxu1 %v1324_v39  ;;  %v1356_v7 = vpack.c.bf16 %v909_v41, %v908_v34 }
 0x11d   : > { %1327 = vmatpush3.bf16.msra.mxu1 %v1326_v53 }
 0x11e   : > { %v1306_v11 = vpop.f32.mrb[28].mxu0  ;;  %1329 = vmatprep.subr.bf16.mxu1 %v1328_v25 }
 0x11f   : > { %811 = vst [vmem:[%s1542_s7 + $0xf0] sm:$0xff] %v1306_v11  ;;  %v667_v22 = vpop.f32.mrb[29].mxu0  ;;  %v914_v35 = vmul.f32 %v1306_v11, %v1306_v11 }
 0x120   : > { %809 = vst [vmem:[%s1542_s7 + $0xe0] sm:$0xff] %v667_v22  ;;  %v1307_v33 = vpop.f32.mrb[30].mxu0  ;;  %v912_v17 = vmul.f32 %v667_v22, %v667_v22 }
 0x121   : > { %812 = vst [vmem:[%s1542_s7 + $0xf8] sm:$0xff] %v1307_v33  ;;  %v1336_v37 = vpack.c.bf16 %v1307_v33, %v1306_v11  ;;  %v915_v27 = vmul.f32 %v1307_v33, %v1307_v33  ;;  %v670_v30 = vpop.f32.mrb[31].mxu0  ;;  %1331 = vmatpush3.bf16.msra.mxu1 %v1330_v49 }
 0x122   : > { %810 = vst [vmem:[%s1542_s7 + $0xe8] sm:$0xff] %v670_v30  ;;  %v1332_v19 = vpack.c.bf16 %v670_v30, %v667_v22  ;;  %v913_v46 = vmul.f32 %v670_v30, %v670_v30 }
 0x123   : > { %v1368_v51 = vpack.c.bf16 %v915_v27, %v914_v35 }
 0x124   : > { %v1364_v53 = vpack.c.bf16 %v913_v46, %v912_v17  ;;  %1333 = vmatprep.subr.bf16.mxu1 %v1332_v19 }
 0x125   : > { %1335 = vmatpush3.bf16.msra.mxu1 %v1334_v1 }
 0x126   : > { %1337 = vmatprep.subr.bf16.mxu1 %v1336_v37 }
 0x129   : > { %1339 = vmatpush3.bf16.msra.mxu1 %v1338_v61 }
 0x12a   : > { %1341 = vmatprep.subr.bf16.mxu1 %v1340_v16 }
 0x12c   : > { %878 = vmatmul.mubr.f32.vlgmr.msra.gmra.mrb[0].mxu1 %v1441_v20 }
 0x12d   : > { %1343 = vmatpush3.bf16.msra.mxu1 %v1342_v32  ;;  %980 = vmatprep.mubr.f32.mxu1 %v1441_v20 }
 0x12e   : > { %1345 = vmatprep.subr.bf16.mxu1 %v1344_v15 }
 0x131   : > { %1347 = vmatpush3.bf16.msra.mxu1 %v1346_v31 }
 0x132   : > { %1349 = vmatprep.subr.bf16.mxu1 %v1348_v14 }
 0x135   : > { %1351 = vmatpush3.bf16.msra.mxu1 %v1350_v44 }
 0x136   : > { %1353 = vmatprep.subr.bf16.mxu1 %v1352_v9 }
 0x139   : > { %1355 = vmatpush3.bf16.msra.mxu1 %v1354_v43 }
 0x13a   : > { %1357 = vmatprep.subr.bf16.mxu1 %v1356_v7 }
 0x13d   : > { %1359 = vmatpush3.bf16.msra.mxu1 %v1358_v56 }
 0x13e   : > { %1361 = vmatprep.subr.bf16.mxu1 %v1360_v6 }
 0x141   : > { %1363 = vmatpush3.bf16.msra.mxu1 %v1362_v55 }
 0x142   : > { %1365 = vmatprep.subr.bf16.mxu1 %v1364_v53 }
 0x145   : > { %1367 = vmatpush3.bf16.msra.mxu1 %v1366_v4 }
 0x146   : > { %1369 = vmatprep.subr.bf16.mxu1 %v1368_v51 }
 0x149   : > { %1371 = vmatpush3.bf16.msra.mxu1 %v1370_v3 }
 0x14c   : > { %981 = vmatmul.mubr.f32.vlgmr.msra.gmra.mrb[2].mxu1 %v1441_v20 }
 0x1ff   : > { %v1232_v24 = vpop.f32.mrb[0].mxu1 }
 0x200   : > { %v1233_v26 = vpop.f32.mrb[1].mxu1 }
 0x201   : > { %v1234_v28 = vadd.f32 %v1233_v26, %v1232_v24 }
 0x203   : > { %883 = vst [vmem:[%s262_s11] sm:$0xff] %v1234_v28 }
 0x21f   : > { %v1267_v29 = vpop.f32.mrb[2].mxu1 }
 0x220   : > { %v1268_v31 = vpop.f32.mrb[3].mxu1 }
 0x221   : > { %v1269_v32 = vadd.f32 %v1268_v31, %v1267_v29 }
 0x223   : > { %986 = vst [vmem:[%s266_s14] sm:$0xff] %v1269_v32 }
 0x224 PF: > { %s15_s17 = sadd.s32 1, %s1439_s17   ;;  %s1814_s15 = smov %s1435_s16 }
 0x225   : > { %p12_p6 = scmp.ge.s32.totalorder %s15_s17, 4   ;;  %s1815_s16 = smov %s1817_s18 }
 0x227   :  { %14 = sbr.rel (!%p12_p6) target bundleno = 2 (0x2), region = 93 }

// kernel: res_conv_block_with_bn.7
= control target key start
LH: loop header
LB: loop body
LE: loop exit
PB: predicated region body
PF: predicated region fallthrough
CT: control target
= control target key end

     0   :  { %s1493_s15 = smov 0   ;;  %s1495_s16 = smov 0   ;;  %s1841_s0 = inlined_call_operand.vmem [shape: bf16[512,72], index: 0, kind: input, shape index: {}]   ;;  %s1842_s1 = inlined_call_operand.vmem [shape: bf16[72,128], index: 1, kind: input, shape index: {}]   ;;  %s1843_s2 = inlined_call_operand.vmem [shape: f32[512,128], index: 2, kind: output, shape index: {0}]   ;;  %s1844_s3 = inlined_call_operand.vmem [shape: f32[16,128], index: 3, kind: output, shape index: {1}]   ;;  %s1845_s4 = inlined_call_operand.vmem [shape: f32[16,128], index: 4, kind: output, shape index: {2}]  }
   0x1   :  { %s1497_s17 = smov 0  }
   0x2 LB: > { %s27_s18 = sadd.s32 1, %s1461_s16  ;;  %p1153_p0 = scmp.ge.s32.totalorder %s1465_s17, 1  ;;  %s1465_s17 = sphi %s1497_s17, %s15_s17   ;;  %s1461_s16 = sphi %s1495_s16, %s1847_s16   ;;  %s1457_s15 = sphi %s1493_s15, %s1846_s15  }
   0x3   : > { %p29_p1 = scmp.ge.s32.totalorder %s27_s18, 2  ;;  %p196_p2 = scmp.lt.s32.totalorder %s1465_s17, 3 }
   0x5   : > { %s1849_s18 = smov (%p29_p1, %s27_s18), 0  ;;  %p197_p3 = pnand %p1153_p0, %p196_p2 }
   0x6   : > { %v1422_v0 = vld [vmem:[%s1842_s1] sm:$0xff] (!%p197_p3)   ;;  %v1423_v1 = vld [vmem:[%s1842_s1 + $0x8] sm:$0xff] (!%p197_p3)   ;;  %s1154_s23 = sshll.u32 (!%p197_p3), %s1457_s15, 5  ;;  %v1424_v2 = vld [vmem:[%s1842_s1 + $0x10] sm:$0xff] (!%p197_p3)   ;;  %vm484_vm0 = vcmask (!%p197_p3), 588800   ;;  %vm533_vm1 = vcmask (!%p197_p3), 1043456  }
   0x7   : > { %200 = sbr.rel (%p197_p3) target bundleno = 556 (0x22c), region = 28  ;;  %1290 = vmatprep.subr.bf16.mxu0 (!%p197_p3), %v1422_v0  ;;  %p239_p4 = scmp.lt.s32.totalorder (!%p197_p3), %s1154_s23, 63  ;;  %v1425_v3 = vld [vmem:[%s1842_s1 + $0x18] sm:$0xff] (!%p197_p3)   ;;  %v1426_v5 = vld [vmem:[%s1842_s1 + $0x20] ss:$0 sps:$4 sm:$0xff] (!%p197_p3)   ;;  %v1467_v22 = vmov (!%p197_p3), 1.0  }
   0x8   : > { %1291 = vmatpush3.bf16.msra.mxu0 (!%p197_p3), %v1422_v0  ;;  %v535_v6 = vsel (!%p197_p3), %vm533_vm1, %v1426_v5, 0  ;;  %893 = vmatprep.mubr.f32.mxu1 (!%p197_p3), %v1467_v22  ;;  %p259_p5 = scmp.lt.s32.totalorder (!%p197_p3), %s1457_s15, 1 }
   0x9   : > { %1292 = vmatprep.subr.bf16.mxu0 (!%p197_p3), %v1423_v1 }
   0xc   : > { %1293 = vmatpush3.bf16.msra.mxu0 (!%p197_p3), %v1423_v1 }
   0xd   : > { %1294 = vmatprep.subr.bf16.mxu0 (!%p197_p3), %v1424_v2 }
   0xe   : > { %s1851_s23 = smov (!%p239_p4, %s1154_s23), 63  ;;  %s1853_s15 = smov (!%p259_p5, %s1457_s15), 1 }
   0xf   : > { %s1155_s26 = sshll.u32 %s1851_s23, 2  ;;  %s1157_s8 = sshll.u32 %s1851_s23, 3 }
  0x10   : > { %s1532_s5 = scalar_lea.vmem %s1841_s0, %s1155_s26  ;;  %1295 = vmatpush3.bf16.msra.mxu0 %v1424_v2  ;;  %s1574_s11 = scalar_lea.vmem %s1843_s2, %s1157_s8 }
  0x11   : > { %v1427_v4 = vld [vmem:[%s1532_s5] sm:$0xff]   ;;  %1296 = vmatprep.subr.bf16.mxu0 %v1425_v3  ;;  %v1428_v7 = vld [vmem:[%s1532_s5 + $0x8] sm:$0xff]   ;;  %v1429_v8 = vld [vmem:[%s1532_s5 + $0x10] sm:$0xff]   ;;  %s1158_s12 = sshll.u32 %s1853_s15, 3 }
  0x12   : > { %1300 = vmatprep.mubr.msk.bf16.mxu0 %vm484_vm0, %v1427_v4  ;;  %v1430_v9 = vld [vmem:[%s1532_s5 + $0x18] sm:$0xff]   ;;  %v1431_v10 = vld [vmem:[%s1532_s5 + $0x20] sm:$0xff]   ;;  %v1432_v11 = vld [vmem:[%s1532_s5 + $0x28] sm:$0xff]   ;;  %s262_s19 = scalar_lea.vmem %s1844_s3, %s1158_s12  ;;  %s266_s22 = scalar_lea.vmem %s1845_s4, %s1158_s12 }
  0x13   : > { %v1433_v12 = vld [vmem:[%s1532_s5 + $0x30] sm:$0xff]   ;;  %v1434_v13 = vld [vmem:[%s1532_s5 + $0x38] sm:$0xff]   ;;  %v1435_v14 = vld [vmem:[%s1532_s5 + $0x40] sm:$0xff]  }
  0x14   : > { %1297 = vmatpush3.bf16.msra.mxu0 %v1425_v3  ;;  %v1436_v15 = vld [vmem:[%s1532_s5 + $0x48] sm:$0xff]   ;;  %v1437_v16 = vld [vmem:[%s1532_s5 + $0x50] sm:$0xff]   ;;  %v1438_v17 = vld [vmem:[%s1532_s5 + $0x58] sm:$0xff]  }
  0x15   : > { %1396 = vmatprep.subr.msk.bf16.mxu0 %vm533_vm1, %v1426_v5  ;;  %v1439_v18 = vld [vmem:[%s1532_s5 + $0x60] sm:$0xff]   ;;  %v1440_v19 = vld [vmem:[%s1532_s5 + $0x68] sm:$0xff]   ;;  %v1441_v20 = vld [vmem:[%s1532_s5 + $0x70] sm:$0xff]  }
  0x16   : > { %v1442_v21 = vld [vmem:[%s1532_s5 + $0x78] sm:$0xff]  }
  0x18   : > { %1299 = vmatpush3.bf16.msra.mxu0 %v535_v6 }
  0x1b   : > { %1301 = vmatmul.mubr.msk.bf16.vlgmr.msra.gmra.mrb[0].mxu0 %vm484_vm0, %v1428_v7 }
  0x1c   : > { %1304 = vmatprep.mubr.msk.bf16.mxu0 %vm484_vm0, %v1429_v8 }
  0x23   : > { %1305 = vmatmul.mubr.msk.bf16.gmra.mrb[4].mxu0 %vm484_vm0, %v1430_v9 }
  0x24   : > { %1308 = vmatprep.mubr.msk.bf16.mxu0 %vm484_vm0, %v1431_v10 }
  0x2b   : > { %1309 = vmatmul.mubr.msk.bf16.gmra.mrb[8].mxu0 %vm484_vm0, %v1432_v11 }
  0x2c   : > { %1312 = vmatprep.mubr.msk.bf16.mxu0 %vm484_vm0, %v1433_v12 }
  0x33   : > { %1313 = vmatmul.mubr.msk.bf16.gmra.mrb[12].mxu0 %vm484_vm0, %v1434_v13 }
  0x34   : > { %1316 = vmatprep.mubr.msk.bf16.mxu0 %vm484_vm0, %v1435_v14 }
  0x3b   : > { %1317 = vmatmul.mubr.msk.bf16.gmra.mrb[16].mxu0 %vm484_vm0, %v1436_v15 }
  0x3c   : > { %1320 = vmatprep.mubr.msk.bf16.mxu0 %vm484_vm0, %v1437_v16 }
  0x43   : > { %1321 = vmatmul.mubr.msk.bf16.gmra.mrb[20].mxu0 %vm484_vm0, %v1438_v17 }
  0x44   : > { %1324 = vmatprep.mubr.msk.bf16.mxu0 %vm484_vm0, %v1439_v18 }
  0x4b   : > { %1325 = vmatmul.mubr.msk.bf16.gmra.mrb[24].mxu0 %vm484_vm0, %v1440_v19 }
  0x4c   : > { %1328 = vmatprep.mubr.msk.bf16.mxu0 %vm484_vm0, %v1441_v20 }
  0x53   : > { %1329 = vmatmul.mubr.msk.bf16.gmra.mrb[28].mxu0 %vm484_vm0, %v1442_v21 }
  0xee   : > { %v1576_v23 = vpop.f32.mrb[0].mxu0 }
  0xef   : > { %799 = vst [vmem:[%s1574_s11 + $0x10] sm:$0xff] %v1576_v23  ;;  %v1580_v24 = vpop.f32.mrb[1].mxu0  ;;  %v1588_v26 = vmul.f32 %v1576_v23, %v1576_v23 }
  0xf0   : > { %797 = vst [vmem:[%s1574_s11] sm:$0xff] %v1580_v24  ;;  %v1584_v25 = vpop.f32.mrb[2].mxu0  ;;  %v1602_v30 = vmul.f32 %v1580_v24, %v1580_v24 }
  0xf1   : > { %800 = vst [vmem:[%s1574_s11 + $0x18] sm:$0xff] %v1584_v25  ;;  %v1338_v27 = vpack.c.bf16 %v1584_v25, %v1576_v23  ;;  %v1596_v28 = vmul.f32 %v1584_v25, %v1584_v25  ;;  %v1598_v29 = vpop.f32.mrb[3].mxu0 }
  0xf2   : > { %798 = vst [vmem:[%s1574_s11 + $0x8] sm:$0xff] %v1598_v29  ;;  %v1608_v31 = vmul.f32 %v1598_v29, %v1598_v29  ;;  %v1334_v32 = vpack.c.bf16 %v1598_v29, %v1580_v24 }
  0xf3   : > { %v1370_v33 = vpack.c.bf16 %v1596_v28, %v1588_v26 }
  0xf4   : > { %v1366_v34 = vpack.c.bf16 %v1608_v31, %v1602_v30 }
  0xf6   : > { %v1616_v35 = vpop.f32.mrb[4].mxu0 }
  0xf7   : > { %803 = vst [vmem:[%s1574_s11 + $0x30] sm:$0xff] %v1616_v35  ;;  %v1620_v36 = vpop.f32.mrb[5].mxu0  ;;  %v1628_v38 = vmul.f32 %v1616_v35, %v1616_v35 }
  0xf8   : > { %801 = vst [vmem:[%s1574_s11 + $0x20] sm:$0xff] %v1620_v36  ;;  %v1624_v37 = vpop.f32.mrb[6].mxu0  ;;  %v1642_v42 = vmul.f32 %v1620_v36, %v1620_v36 }
  0xf9   : > { %804 = vst [vmem:[%s1574_s11 + $0x38] sm:$0xff] %v1624_v37  ;;  %v1346_v39 = vpack.c.bf16 %v1624_v37, %v1616_v35  ;;  %v1636_v40 = vmul.f32 %v1624_v37, %v1624_v37  ;;  %v1638_v41 = vpop.f32.mrb[7].mxu0 }
  0xfa   : > { %802 = vst [vmem:[%s1574_s11 + $0x28] sm:$0xff] %v1638_v41  ;;  %v1342_v43 = vpack.c.bf16 %v1638_v41, %v1620_v36  ;;  %v1650_v44 = vmul.f32 %v1638_v41, %v1638_v41 }
  0xfb   : > { %v1378_v45 = vpack.c.bf16 %v1636_v40, %v1628_v38 }
  0xfc   : > { %v1374_v46 = vpack.c.bf16 %v1650_v44, %v1642_v42 }
  0xfe   : > { %v1656_v47 = vpop.f32.mrb[8].mxu0 }
  0xff   : > { %807 = vst [vmem:[%s1574_s11 + $0x50] sm:$0xff] %v1656_v47  ;;  %v1660_v48 = vpop.f32.mrb[9].mxu0  ;;  %v1668_v50 = vmul.f32 %v1656_v47, %v1656_v47 }
 0x100   : > { %805 = vst [vmem:[%s1574_s11 + $0x40] sm:$0xff] %v1660_v48  ;;  %v1664_v49 = vpop.f32.mrb[10].mxu0  ;;  %v1682_v54 = vmul.f32 %v1660_v48, %v1660_v48 }
 0x101   : > { %808 = vst [vmem:[%s1574_s11 + $0x58] sm:$0xff] %v1664_v49  ;;  %v1354_v51 = vpack.c.bf16 %v1664_v49, %v1656_v47  ;;  %v1676_v52 = vmul.f32 %v1664_v49, %v1664_v49  ;;  %v1678_v53 = vpop.f32.mrb[11].mxu0 }
 0x102   : > { %806 = vst [vmem:[%s1574_s11 + $0x48] sm:$0xff] %v1678_v53  ;;  %v1350_v55 = vpack.c.bf16 %v1678_v53, %v1660_v48  ;;  %v1690_v56 = vmul.f32 %v1678_v53, %v1678_v53 }
 0x103   : > { %v1386_v57 = vpack.c.bf16 %v1676_v52, %v1668_v50 }
 0x104   : > { %v1382_v58 = vpack.c.bf16 %v1690_v56, %v1682_v54 }
 0x106   : > { %v1696_v59 = vpop.f32.mrb[12].mxu0 }
 0x107   : > { %811 = vst [vmem:[%s1574_s11 + $0x70] sm:$0xff] %v1696_v59  ;;  %v1700_v60 = vpop.f32.mrb[13].mxu0  ;;  %v1708_v62 = vmul.f32 %v1696_v59, %v1696_v59 }
 0x108   : > { %809 = vst [vmem:[%s1574_s11 + $0x60] sm:$0xff] %v1700_v60  ;;  %v1704_v61 = vpop.f32.mrb[14].mxu0  ;;  %v1722_v2 = vmul.f32 %v1700_v60, %v1700_v60 }
 0x109   : > { %812 = vst [vmem:[%s1574_s11 + $0x78] sm:$0xff] %v1704_v61  ;;  %v1362_v63 = vpack.c.bf16 %v1704_v61, %v1696_v59  ;;  %v1716_v0 = vmul.f32 %v1704_v61, %v1704_v61  ;;  %v1718_v1 = vpop.f32.mrb[15].mxu0 }
 0x10a   : > { %810 = vst [vmem:[%s1574_s11 + $0x68] sm:$0xff] %v1718_v1  ;;  %v1358_v3 = vpack.c.bf16 %v1718_v1, %v1700_v60  ;;  %v1730_v4 = vmul.f32 %v1718_v1, %v1718_v1 }
 0x10b   : > { %v1394_v5 = vpack.c.bf16 %v1716_v0, %v1708_v62 }
 0x10c   : > { %v1390_v6 = vpack.c.bf16 %v1730_v4, %v1722_v2 }
 0x10e   : > { %v1318_v7 = vpop.f32.mrb[16].mxu0 }
 0x10f   : > { %815 = vst [vmem:[%s1574_s11 + $0x90] sm:$0xff] %v1318_v7  ;;  %v635_v8 = vpop.f32.mrb[17].mxu0  ;;  %v1738_v10 = vmul.f32 %v1318_v7, %v1318_v7 }
 0x110   : > { %813 = vst [vmem:[%s1574_s11 + $0x80] sm:$0xff] %v635_v8  ;;  %v1319_v9 = vpop.f32.mrb[18].mxu0  ;;  %v1743_v14 = vmul.f32 %v635_v8, %v635_v8 }
 0x111   : > { %816 = vst [vmem:[%s1574_s11 + $0x98] sm:$0xff] %v1319_v9  ;;  %v1336_v11 = vpack.c.bf16 %v1319_v9, %v1318_v7  ;;  %v1741_v12 = vmul.f32 %v1319_v9, %v1319_v9  ;;  %v638_v13 = vpop.f32.mrb[19].mxu0 }
 0x112   : > { %814 = vst [vmem:[%s1574_s11 + $0x88] sm:$0xff] %v638_v13  ;;  %v1746_v15 = vmul.f32 %v638_v13, %v638_v13  ;;  %v1332_v16 = vpack.c.bf16 %v638_v13, %v635_v8 }
 0x113   : > { %v1368_v17 = vpack.c.bf16 %v1741_v12, %v1738_v10 }
 0x114   : > { %1333 = vmatprep.subr.bf16.mxu1 %v1332_v16  ;;  %v1364_v18 = vpack.c.bf16 %v1746_v15, %v1743_v14 }
 0x115   : > { %1335 = vmatpush3.bf16.msra.mxu1 %v1334_v32 }
 0x116   : > { %v1322_v19 = vpop.f32.mrb[20].mxu0  ;;  %1337 = vmatprep.subr.bf16.mxu1 %v1336_v11 }
 0x117   : > { %819 = vst [vmem:[%s1574_s11 + $0xb0] sm:$0xff] %v1322_v19  ;;  %v651_v20 = vpop.f32.mrb[21].mxu0  ;;  %v1757_v7 = vmul.f32 %v1322_v19, %v1322_v19 }
 0x118   : > { %817 = vst [vmem:[%s1574_s11 + $0xa0] sm:$0xff] %v651_v20  ;;  %v1323_v21 = vpop.f32.mrb[22].mxu0  ;;  %v920_v24 = vmul.f32 %v651_v20, %v651_v20 }
 0x119   : > { %820 = vst [vmem:[%s1574_s11 + $0xb8] sm:$0xff] %v1323_v21  ;;  %v1344_v8 = vpack.c.bf16 %v1323_v21, %v1322_v19  ;;  %v923_v9 = vmul.f32 %v1323_v21, %v1323_v21  ;;  %v654_v13 = vpop.f32.mrb[23].mxu0  ;;  %1339 = vmatpush3.bf16.msra.mxu1 %v1338_v27 }
 0x11a   : > { %818 = vst [vmem:[%s1574_s11 + $0xa8] sm:$0xff] %v654_v13  ;;  %v1340_v29 = vpack.c.bf16 %v654_v13, %v651_v20  ;;  %v921_v32 = vmul.f32 %v654_v13, %v654_v13 }
 0x11b   : > { %v1376_v11 = vpack.c.bf16 %v923_v9, %v1757_v7 }
 0x11c   : > { %1341 = vmatprep.subr.bf16.mxu1 %v1340_v29  ;;  %v1372_v16 = vpack.c.bf16 %v921_v32, %v920_v24 }
 0x11d   : > { %1343 = vmatpush3.bf16.msra.mxu1 %v1342_v43 }
 0x11e   : > { %v1326_v19 = vpop.f32.mrb[24].mxu0  ;;  %1345 = vmatprep.subr.bf16.mxu1 %v1344_v8 }
 0x11f   : > { %823 = vst [vmem:[%s1574_s11 + $0xd0] sm:$0xff] %v1326_v19  ;;  %v667_v21 = vpop.f32.mrb[25].mxu0  ;;  %v926_v25 = vmul.f32 %v1326_v19, %v1326_v19 }
 0x120   : > { %821 = vst [vmem:[%s1574_s11 + $0xc0] sm:$0xff] %v667_v21  ;;  %v1327_v23 = vpop.f32.mrb[26].mxu0  ;;  %v924_v36 = vmul.f32 %v667_v21, %v667_v21 }
 0x121   : > { %824 = vst [vmem:[%s1574_s11 + $0xd8] sm:$0xff] %v1327_v23  ;;  %v1352_v27 = vpack.c.bf16 %v1327_v23, %v1326_v19  ;;  %v927_v20 = vmul.f32 %v1327_v23, %v1327_v23  ;;  %v670_v7 = vpop.f32.mrb[27].mxu0  ;;  %1347 = vmatpush3.bf16.msra.mxu1 %v1346_v39 }
 0x122   : > { %822 = vst [vmem:[%s1574_s11 + $0xc8] sm:$0xff] %v670_v7  ;;  %v1348_v41 = vpack.c.bf16 %v670_v7, %v667_v21  ;;  %v925_v43 = vmul.f32 %v670_v7, %v670_v7 }
 0x123   : > { %v1384_v8 = vpack.c.bf16 %v927_v20, %v926_v25 }
 0x124   : > { %1349 = vmatprep.subr.bf16.mxu1 %v1348_v41  ;;  %v1380_v9 = vpack.c.bf16 %v925_v43, %v924_v36 }
 0x125   : > { %1351 = vmatpush3.bf16.msra.mxu1 %v1350_v55 }
 0x126   : > { %v1330_v13 = vpop.f32.mrb[28].mxu0  ;;  %1353 = vmatprep.subr.bf16.mxu1 %v1352_v27 }
 0x127   : > { %827 = vst [vmem:[%s1574_s11 + $0xf0] sm:$0xff] %v1330_v13  ;;  %v683_v24 = vpop.f32.mrb[29].mxu0  ;;  %v930_v37 = vmul.f32 %v1330_v13, %v1330_v13 }
 0x128   : > { %825 = vst [vmem:[%s1574_s11 + $0xe0] sm:$0xff] %v683_v24  ;;  %v1331_v35 = vpop.f32.mrb[30].mxu0  ;;  %v928_v19 = vmul.f32 %v683_v24, %v683_v24 }
 0x129   : > { %828 = vst [vmem:[%s1574_s11 + $0xf8] sm:$0xff] %v1331_v35  ;;  %v1360_v39 = vpack.c.bf16 %v1331_v35, %v1330_v13  ;;  %v931_v29 = vmul.f32 %v1331_v35, %v1331_v35  ;;  %v686_v32 = vpop.f32.mrb[31].mxu0  ;;  %1355 = vmatpush3.bf16.msra.mxu1 %v1354_v51 }
 0x12a   : > { %826 = vst [vmem:[%s1574_s11 + $0xe8] sm:$0xff] %v686_v32  ;;  %v1356_v21 = vpack.c.bf16 %v686_v32, %v683_v24  ;;  %v929_v48 = vmul.f32 %v686_v32, %v686_v32 }
 0x12b   : > { %v1392_v53 = vpack.c.bf16 %v931_v29, %v930_v37 }
 0x12c   : > { %v1388_v55 = vpack.c.bf16 %v929_v48, %v928_v19  ;;  %1357 = vmatprep.subr.bf16.mxu1 %v1356_v21 }
 0x12d   : > { %1359 = vmatpush3.bf16.msra.mxu1 %v1358_v3 }
 0x12e   : > { %1361 = vmatprep.subr.bf16.mxu1 %v1360_v39 }
 0x131   : > { %1363 = vmatpush3.bf16.msra.mxu1 %v1362_v63 }
 0x132   : > { %1365 = vmatprep.subr.bf16.mxu1 %v1364_v18 }
 0x134   : > { %894 = vmatmul.mubr.f32.vlgmr.msra.gmra.mrb[0].mxu1 %v1467_v22 }
 0x135   : > { %1367 = vmatpush3.bf16.msra.mxu1 %v1366_v34  ;;  %996 = vmatprep.mubr.f32.mxu1 %v1467_v22 }
 0x136   : > { %1369 = vmatprep.subr.bf16.mxu1 %v1368_v17 }
 0x139   : > { %1371 = vmatpush3.bf16.msra.mxu1 %v1370_v33 }
 0x13a   : > { %1373 = vmatprep.subr.bf16.mxu1 %v1372_v16 }
 0x13d   : > { %1375 = vmatpush3.bf16.msra.mxu1 %v1374_v46 }
 0x13e   : > { %1377 = vmatprep.subr.bf16.mxu1 %v1376_v11 }
 0x141   : > { %1379 = vmatpush3.bf16.msra.mxu1 %v1378_v45 }
 0x142   : > { %1381 = vmatprep.subr.bf16.mxu1 %v1380_v9 }
 0x145   : > { %1383 = vmatpush3.bf16.msra.mxu1 %v1382_v58 }
 0x146   : > { %1385 = vmatprep.subr.bf16.mxu1 %v1384_v8 }
 0x149   : > { %1387 = vmatpush3.bf16.msra.mxu1 %v1386_v57 }
 0x14a   : > { %1389 = vmatprep.subr.bf16.mxu1 %v1388_v55 }
 0x14d   : > { %1391 = vmatpush3.bf16.msra.mxu1 %v1390_v6 }
 0x14e   : > { %1393 = vmatprep.subr.bf16.mxu1 %v1392_v53 }
 0x151   : > { %1395 = vmatpush3.bf16.msra.mxu1 %v1394_v5 }
 0x154   : > { %997 = vmatmul.mubr.f32.vlgmr.msra.gmra.mrb[2].mxu1 %v1467_v22 }
 0x207   : > { %v1252_v26 = vpop.f32.mrb[0].mxu1 }
 0x208   : > { %v1253_v28 = vpop.f32.mrb[1].mxu1 }
 0x209   : > { %v1254_v30 = vadd.f32 %v1253_v28, %v1252_v26 }
 0x20b   : > { %899 = vst [vmem:[%s262_s19] sm:$0xff] %v1254_v30 }
 0x227   : > { %v1287_v31 = vpop.f32.mrb[2].mxu1 }
 0x228   : > { %v1288_v33 = vpop.f32.mrb[3].mxu1 }
 0x229   : > { %v1289_v34 = vadd.f32 %v1288_v33, %v1287_v31 }
 0x22b   : > { %1002 = vst [vmem:[%s266_s22] sm:$0xff] %v1289_v34 }
 0x22c PF: > { %s15_s17 = sadd.s32 1, %s1465_s17   ;;  %s1846_s15 = smov %s1461_s16 }
 0x22d   : > { %p12_p6 = scmp.ge.s32.totalorder %s15_s17, 4   ;;  %s1847_s16 = smov %s1849_s18 }
 0x22f   :  { %14 = sbr.rel (!%p12_p6) target bundleno = 2 (0x2), region = 93 }

// kernel: res_conv_block_with_bn.9
= control target key start
LH: loop header
LB: loop body
LE: loop exit
PB: predicated region body
PF: predicated region fallthrough
CT: control target
= control target key end

     0   :  { %s729_s21 = smov 0   ;;  %s1004_s0 = inlined_call_operand.vmem [shape: f32[512,128], index: 0, kind: input, shape index: {}]   ;;  %s1005_s1 = inlined_call_operand.vmem [shape: f32[512,128], index: 1, kind: input, shape index: {}]   ;;  %s1006_s2 = inlined_call_operand.vmem [shape: f32[1,128], index: 2, kind: input, shape index: {}]   ;;  %s1007_s3 = inlined_call_operand.vmem [shape: f32[1,128], index: 3, kind: input, shape index: {}]   ;;  %s1008_s4 = inlined_call_operand.vmem [shape: f32[1,128], index: 4, kind: input, shape index: {}]   ;;  %s1009_s5 = inlined_call_operand.vmem [shape: f32[1,128], index: 5, kind: input, shape index: {}]   ;;  %s1010_s6 = inlined_call_operand.vmem [shape: f32[512,128], index: 6, kind: output, shape index: {}]  }
   0x1 LB: > { %s661_s22 = sadd.s32 4294967295, %s692_s21   ;;  %p665_p0 = scmp.ge.s32.totalorder %s692_s21, 1  ;;  %s692_s21 = sphi %s729_s21, %s16_s21  }
   0x2   : > { %p224_p1 = scmp.lt.s32.totalorder %s692_s21, 3 }
   0x4   : > { %p225_p2 = pnand %p665_p0, %p224_p1 }
   0x5   : > { %s666_s23 = sshll.u32 (!%p225_p2), %s661_s22, 5  ;;  %v742_v0 = vld [vmem:[%s1006_s2] ss:$0 sm:$0xff] (!%p225_p2) }
   0x6   : > { %228 = sbr.rel (%p225_p2) target bundleno = 72 (0x48), region = 44  ;;  %p260_p3 = scmp.lt.s32.totalorder (!%p225_p2), %s666_s23, 63  ;;  %v747_v1 = vld [vmem:[%s1008_s4] ss:$0 sm:$0xff] (!%p225_p2) }
   0x7   : > { %v764_v2 = vld [vmem:[%s1007_s3] ss:$0 sm:$0xff] (!%p225_p2) }
   0x8   : > { %v791_v25 = vld [vmem:[%s1009_s5] ss:$0 sm:$0xff] (!%p225_p2) }
   0xd   : > { %s1012_s23 = smov (!%p260_p3, %s666_s23), 63 }
   0xe   : > { %s737_s24 = sshll.u32 %s1012_s23, 3 }
   0xf   : > { %s753_s7 = scalar_lea.vmem %s1004_s0, %s737_s24  ;;  %s759_s10 = scalar_lea.vmem %s1005_s1, %s737_s24 }
  0x10   : > { %v277_v3 = vld [vmem:[%s753_s7] sm:$0xff]  ;;  %v278_v5 = vld [vmem:[%s753_s7 + $0x8] sm:$0xff]  ;;  %v279_v10 = vld [vmem:[%s753_s7 + $0x10] sm:$0xff]  ;;  %s812_s17 = scalar_lea.vmem %s1010_s6, %s737_s24 }
  0x11   : > { %v387_v4 = vld [vmem:[%s759_s10] sm:$0xff]  ;;  %v316_v6 = vmul.f32 %v742_v0, %v277_v3  ;;  %v317_v8 = vmul.f32 %v742_v0, %v278_v5  ;;  %v388_v9 = vld [vmem:[%s759_s10 + $0x8] sm:$0xff]  ;;  %v389_v11 = vld [vmem:[%s759_s10 + $0x10] sm:$0xff]  ;;  %v318_v13 = vmul.f32 %v742_v0, %v279_v10 }
  0x12   : > { %v426_v7 = vmul.f32 %v747_v1, %v387_v4  ;;  %v427_v12 = vmul.f32 %v747_v1, %v388_v9  ;;  %v428_v14 = vmul.f32 %v747_v1, %v389_v11  ;;  %v280_v15 = vld [vmem:[%s753_s7 + $0x18] sm:$0xff]  ;;  %v281_v17 = vld [vmem:[%s753_s7 + $0x20] sm:$0xff]  ;;  %v282_v23 = vld [vmem:[%s753_s7 + $0x28] sm:$0xff] }
  0x13   : > { %v390_v16 = vld [vmem:[%s759_s10 + $0x18] sm:$0xff]  ;;  %v355_v18 = vadd.f32 %v764_v2, %v316_v6  ;;  %v356_v19 = vadd.f32 %v764_v2, %v317_v8  ;;  %v319_v20 = vmul.f32 %v742_v0, %v280_v15  ;;  %v391_v22 = vld [vmem:[%s759_s10 + $0x20] sm:$0xff]  ;;  %v392_v24 = vld [vmem:[%s759_s10 + $0x28] sm:$0xff]  ;;  %v357_v26 = vadd.f32 %v764_v2, %v318_v13 }
  0x14   : > { %v429_v21 = vmul.f32 %v747_v1, %v390_v16  ;;  %v320_v27 = vmul.f32 %v742_v0, %v281_v17  ;;  %v430_v28 = vmul.f32 %v747_v1, %v391_v22  ;;  %v321_v29 = vmul.f32 %v742_v0, %v282_v23  ;;  %v283_v30 = vld [vmem:[%s753_s7 + $0x30] sm:$0xff]  ;;  %v284_v40 = vld [vmem:[%s753_s7 + $0x38] sm:$0xff]  ;;  %v285_v50 = vld [vmem:[%s753_s7 + $0x40] sm:$0xff] }
  0x15   : > { %v393_v31 = vld [vmem:[%s759_s10 + $0x30] sm:$0xff]  ;;  %v458_v32 = vadd.f32 %v426_v7, %v355_v18  ;;  %v459_v33 = vadd.f32 %v427_v12, %v356_v19  ;;  %v358_v34 = vadd.f32 %v764_v2, %v319_v20  ;;  %v431_v35 = vmul.f32 %v747_v1, %v392_v24  ;;  %v394_v49 = vld [vmem:[%s759_s10 + $0x38] sm:$0xff]  ;;  %v395_v55 = vld [vmem:[%s759_s10 + $0x40] sm:$0xff] }
  0x16   : > { %v460_v36 = vadd.f32 %v428_v14, %v357_v26  ;;  %v359_v37 = vadd.f32 %v764_v2, %v320_v27  ;;  %v360_v38 = vadd.f32 %v764_v2, %v321_v29  ;;  %v322_v39 = vmul.f32 %v742_v0, %v283_v30  ;;  %v286_v60 = vld [vmem:[%s753_s7 + $0x48] sm:$0xff]  ;;  %v287_v5 = vld [vmem:[%s753_s7 + $0x50] sm:$0xff]  ;;  %v288_v7 = vld [vmem:[%s753_s7 + $0x58] sm:$0xff] }
  0x17   : > { %v497_v41 = vadd.f32 %v791_v25, %v458_v32  ;;  %v498_v42 = vadd.f32 %v791_v25, %v459_v33  ;;  %v461_v43 = vadd.f32 %v429_v21, %v358_v34  ;;  %v432_v44 = vmul.f32 %v747_v1, %v393_v31  ;;  %v396_v61 = vld [vmem:[%s759_s10 + $0x48] sm:$0xff]  ;;  %v397_v6 = vld [vmem:[%s759_s10 + $0x50] sm:$0xff]  ;;  %v398_v12 = vld [vmem:[%s759_s10 + $0x58] sm:$0xff] }
  0x18   : > { %v499_v45 = vadd.f32 %v791_v25, %v460_v36  ;;  %v462_v46 = vadd.f32 %v430_v28, %v359_v37  ;;  %v463_v47 = vadd.f32 %v431_v35, %v360_v38  ;;  %v361_v48 = vadd.f32 %v764_v2, %v322_v39  ;;  %v289_v17 = vld [vmem:[%s753_s7 + $0x60] sm:$0xff]  ;;  %v290_v23 = vld [vmem:[%s753_s7 + $0x68] sm:$0xff]  ;;  %v291_v34 = vld [vmem:[%s753_s7 + $0x70] sm:$0xff] }
  0x19   : > { %v529_v51 = vmax.f32 %v497_v41, 0.0  ;;  %v530_v52 = vmax.f32 %v498_v42, 0.0  ;;  %v500_v53 = vadd.f32 %v791_v25, %v461_v43  ;;  %v323_v54 = vmul.f32 %v742_v0, %v284_v40  ;;  %v399_v18 = vld [vmem:[%s759_s10 + $0x60] sm:$0xff]  ;;  %v400_v29 = vld [vmem:[%s759_s10 + $0x68] sm:$0xff]  ;;  %v401_v39 = vld [vmem:[%s759_s10 + $0x70] sm:$0xff] }
  0x1a   : > { %v531_v56 = vmax.f32 %v499_v45, 0.0  ;;  %v501_v57 = vadd.f32 %v791_v25, %v462_v46  ;;  %v502_v58 = vadd.f32 %v791_v25, %v463_v47  ;;  %v464_v59 = vadd.f32 %v432_v44, %v361_v48  ;;  %v292_v44 = vld [vmem:[%s753_s7 + $0x78] sm:$0xff] }
  0x1b   : > { %561 = vst [vmem:[%s812_s17] sm:$0xff] %v529_v51  ;;  %562 = vst [vmem:[%s812_s17 + $0x8] sm:$0xff] %v530_v52  ;;  %v532_v62 = vmax.f32 %v500_v53, 0.0  ;;  %v362_v63 = vadd.f32 %v764_v2, %v323_v54  ;;  %v433_v3 = vmul.f32 %v747_v1, %v394_v49  ;;  %v324_v4 = vmul.f32 %v742_v0, %v285_v50  ;;  %v402_v49 = vld [vmem:[%s759_s10 + $0x78] sm:$0xff]  ;;  %v293_v54 = vld [vmem:[%s753_s7 + $0x80] sm:$0xff] }
  0x1c   : > { %563 = vst [vmem:[%s812_s17 + $0x10] sm:$0xff] %v531_v56  ;;  %v533_v8 = vmax.f32 %v501_v57, 0.0  ;;  %v534_v9 = vmax.f32 %v502_v58, 0.0  ;;  %v503_v10 = vadd.f32 %v791_v25, %v464_v59  ;;  %v434_v11 = vmul.f32 %v747_v1, %v395_v55  ;;  %v403_v59 = vld [vmem:[%s759_s10 + $0x80] sm:$0xff] }
  0x1d   : > { %564 = vst [vmem:[%s812_s17 + $0x18] sm:$0xff] %v532_v62  ;;  %v465_v13 = vadd.f32 %v433_v3, %v362_v63  ;;  %v363_v14 = vadd.f32 %v764_v2, %v324_v4  ;;  %v325_v15 = vmul.f32 %v742_v0, %v286_v60  ;;  %v435_v16 = vmul.f32 %v747_v1, %v396_v61  ;;  %v294_v60 = vld [vmem:[%s753_s7 + $0x88] sm:$0xff] }
  0x1e   : > { %565 = vst [vmem:[%s812_s17 + $0x20] sm:$0xff] %v533_v8  ;;  %566 = vst [vmem:[%s812_s17 + $0x28] sm:$0xff] %v534_v9  ;;  %v535_v19 = vmax.f32 %v503_v10, 0.0  ;;  %v326_v20 = vmul.f32 %v742_v0, %v287_v5  ;;  %v436_v21 = vmul.f32 %v747_v1, %v397_v6  ;;  %v327_v22 = vmul.f32 %v742_v0, %v288_v7  ;;  %v404_v61 = vld [vmem:[%s759_s10 + $0x88] sm:$0xff]  ;;  %v295_v9 = vld [vmem:[%s753_s7 + $0x90] sm:$0xff] }
  0x1f   : > { %v504_v24 = vadd.f32 %v791_v25, %v465_v13  ;;  %v466_v26 = vadd.f32 %v434_v11, %v363_v14  ;;  %v364_v27 = vadd.f32 %v764_v2, %v325_v15  ;;  %v437_v28 = vmul.f32 %v747_v1, %v398_v12  ;;  %v405_v10 = vld [vmem:[%s759_s10 + $0x90] sm:$0xff]  ;;  %v296_v11 = vld [vmem:[%s753_s7 + $0x98] sm:$0xff] }
  0x20   : > { %567 = vst [vmem:[%s812_s17 + $0x30] sm:$0xff] %v535_v19  ;;  %v365_v30 = vadd.f32 %v764_v2, %v326_v20  ;;  %v366_v31 = vadd.f32 %v764_v2, %v327_v22  ;;  %v328_v32 = vmul.f32 %v742_v0, %v289_v17  ;;  %v438_v33 = vmul.f32 %v747_v1, %v399_v18 }
  0x21   : > { %v536_v35 = vmax.f32 %v504_v24, 0.0  ;;  %v505_v36 = vadd.f32 %v791_v25, %v466_v26  ;;  %v467_v37 = vadd.f32 %v435_v16, %v364_v27  ;;  %v329_v38 = vmul.f32 %v742_v0, %v290_v23  ;;  %v406_v16 = vld [vmem:[%s759_s10 + $0x98] sm:$0xff]  ;;  %v407_v27 = vld [vmem:[%s759_s10 + $0xa0] sm:$0xff] }
  0x22   : > { %v468_v40 = vadd.f32 %v436_v21, %v365_v30  ;;  %v469_v41 = vadd.f32 %v437_v28, %v366_v31  ;;  %v367_v42 = vadd.f32 %v764_v2, %v328_v32  ;;  %v439_v43 = vmul.f32 %v747_v1, %v400_v29  ;;  %v297_v21 = vld [vmem:[%s753_s7 + $0xa0] sm:$0xff]  ;;  %v298_v28 = vld [vmem:[%s753_s7 + $0xa8] sm:$0xff] }
  0x23   : > { %568 = vst [vmem:[%s812_s17 + $0x38] sm:$0xff] %v536_v35  ;;  %v537_v45 = vmax.f32 %v505_v36, 0.0  ;;  %v506_v46 = vadd.f32 %v791_v25, %v467_v37  ;;  %v368_v47 = vadd.f32 %v764_v2, %v329_v38  ;;  %v330_v48 = vmul.f32 %v742_v0, %v291_v34  ;;  %v408_v37 = vld [vmem:[%s759_s10 + $0xa8] sm:$0xff]  ;;  %v299_v38 = vld [vmem:[%s753_s7 + $0xb0] sm:$0xff] }
  0x24   : > { %v507_v50 = vadd.f32 %v791_v25, %v468_v40  ;;  %v508_v51 = vadd.f32 %v791_v25, %v469_v41  ;;  %v470_v52 = vadd.f32 %v438_v33, %v367_v42  ;;  %v440_v53 = vmul.f32 %v747_v1, %v401_v39 }
  0x25   : > { %569 = vst [vmem:[%s812_s17 + $0x40] sm:$0xff] %v537_v45  ;;  %v538_v55 = vmax.f32 %v506_v46, 0.0  ;;  %v471_v56 = vadd.f32 %v439_v43, %v368_v47  ;;  %v369_v57 = vadd.f32 %v764_v2, %v330_v48  ;;  %v331_v58 = vmul.f32 %v742_v0, %v292_v44  ;;  %v409_v47 = vld [vmem:[%s759_s10 + $0xb0] sm:$0xff]  ;;  %v300_v48 = vld [vmem:[%s753_s7 + $0xb8] sm:$0xff] }
  0x26   : > { %v539_v62 = vmax.f32 %v507_v50, 0.0  ;;  %v540_v63 = vmax.f32 %v508_v51, 0.0  ;;  %v509_v3 = vadd.f32 %v791_v25, %v470_v52  ;;  %v441_v4 = vmul.f32 %v747_v1, %v402_v49 }
  0x27   : > { %570 = vst [vmem:[%s812_s17 + $0x48] sm:$0xff] %v538_v55  ;;  %v510_v5 = vadd.f32 %v791_v25, %v471_v56  ;;  %v472_v6 = vadd.f32 %v440_v53, %v369_v57  ;;  %v370_v7 = vadd.f32 %v764_v2, %v331_v58  ;;  %v332_v8 = vmul.f32 %v742_v0, %v293_v54  ;;  %v410_v53 = vld [vmem:[%s759_s10 + $0xb8] sm:$0xff]  ;;  %v301_v58 = vld [vmem:[%s753_s7 + $0xc0] sm:$0xff] }
  0x28   : > { %571 = vst [vmem:[%s812_s17 + $0x50] sm:$0xff] %v539_v62  ;;  %572 = vst [vmem:[%s812_s17 + $0x58] sm:$0xff] %v540_v63  ;;  %v541_v12 = vmax.f32 %v509_v3, 0.0  ;;  %v442_v13 = vmul.f32 %v747_v1, %v403_v59  ;;  %v333_v14 = vmul.f32 %v742_v0, %v294_v60  ;;  %v443_v15 = vmul.f32 %v747_v1, %v404_v61  ;;  %v411_v63 = vld [vmem:[%s759_s10 + $0xc0] sm:$0xff]  ;;  %v302_v3 = vld [vmem:[%s753_s7 + $0xc8] sm:$0xff] }
  0x29   : > { %v542_v17 = vmax.f32 %v510_v5, 0.0  ;;  %v511_v18 = vadd.f32 %v791_v25, %v472_v6  ;;  %v473_v19 = vadd.f32 %v441_v4, %v370_v7  ;;  %v371_v20 = vadd.f32 %v764_v2, %v332_v8  ;;  %v412_v4 = vld [vmem:[%s759_s10 + $0xc8] sm:$0xff] }
  0x2a   : > { %573 = vst [vmem:[%s812_s17 + $0x60] sm:$0xff] %v541_v12  ;;  %v372_v22 = vadd.f32 %v764_v2, %v333_v14  ;;  %v334_v23 = vmul.f32 %v742_v0, %v295_v9  ;;  %v444_v24 = vmul.f32 %v747_v1, %v405_v10  ;;  %v335_v26 = vmul.f32 %v742_v0, %v296_v11  ;;  %v413_v14 = vld [vmem:[%s759_s10 + $0xd0] sm:$0xff] }
  0x2b   : > { %574 = vst [vmem:[%s812_s17 + $0x68] sm:$0xff] %v542_v17  ;;  %v543_v29 = vmax.f32 %v511_v18, 0.0  ;;  %v512_v30 = vadd.f32 %v791_v25, %v473_v19  ;;  %v474_v31 = vadd.f32 %v442_v13, %v371_v20  ;;  %v445_v32 = vmul.f32 %v747_v1, %v406_v16  ;;  %v303_v13 = vld [vmem:[%s753_s7 + $0xd0] sm:$0xff]  ;;  %v414_v20 = vld [vmem:[%s759_s10 + $0xd8] sm:$0xff] }
  0x2c   : > { %v475_v33 = vadd.f32 %v443_v15, %v372_v22  ;;  %v373_v34 = vadd.f32 %v764_v2, %v334_v23  ;;  %v374_v35 = vadd.f32 %v764_v2, %v335_v26  ;;  %v336_v36 = vmul.f32 %v742_v0, %v297_v21  ;;  %v304_v15 = vld [vmem:[%s753_s7 + $0xd8] sm:$0xff]  ;;  %v305_v26 = vld [vmem:[%s753_s7 + $0xe0] sm:$0xff] }
  0x2d   : > { %575 = vst [vmem:[%s812_s17 + $0x70] sm:$0xff] %v543_v29  ;;  %v544_v39 = vmax.f32 %v512_v30, 0.0  ;;  %v513_v40 = vadd.f32 %v791_v25, %v474_v31  ;;  %v446_v41 = vmul.f32 %v747_v1, %v407_v27  ;;  %v337_v42 = vmul.f32 %v742_v0, %v298_v28  ;;  %v415_v31 = vld [vmem:[%s759_s10 + $0xe0] sm:$0xff] }
  0x2e   : > { %v514_v43 = vadd.f32 %v791_v25, %v475_v33  ;;  %v476_v44 = vadd.f32 %v444_v24, %v373_v34  ;;  %v477_v45 = vadd.f32 %v445_v32, %v374_v35  ;;  %v375_v46 = vadd.f32 %v764_v2, %v336_v36  ;;  %v306_v32 = vld [vmem:[%s753_s7 + $0xe8] sm:$0xff] }
  0x2f   : > { %576 = vst [vmem:[%s812_s17 + $0x78] sm:$0xff] %v544_v39  ;;  %v545_v49 = vmax.f32 %v513_v40, 0.0  ;;  %v376_v50 = vadd.f32 %v764_v2, %v337_v42  ;;  %v447_v51 = vmul.f32 %v747_v1, %v408_v37  ;;  %v338_v52 = vmul.f32 %v742_v0, %v299_v38  ;;  %v307_v42 = vld [vmem:[%s753_s7 + $0xf0] sm:$0xff] }
  0x30   : > { %v546_v54 = vmax.f32 %v514_v43, 0.0  ;;  %v515_v55 = vadd.f32 %v791_v25, %v476_v44  ;;  %v516_v56 = vadd.f32 %v791_v25, %v477_v45  ;;  %v478_v57 = vadd.f32 %v446_v41, %v375_v46  ;;  %v416_v41 = vld [vmem:[%s759_s10 + $0xe8] sm:$0xff] }
  0x31   : > { %577 = vst [vmem:[%s812_s17 + $0x80] sm:$0xff] %v545_v49  ;;  %v479_v59 = vadd.f32 %v447_v51, %v376_v50  ;;  %v377_v60 = vadd.f32 %v764_v2, %v338_v52  ;;  %v448_v61 = vmul.f32 %v747_v1, %v409_v47  ;;  %v339_v62 = vmul.f32 %v742_v0, %v300_v48  ;;  %v417_v51 = vld [vmem:[%s759_s10 + $0xf0] sm:$0xff]  ;;  %v308_v52 = vld [vmem:[%s753_s7 + $0xf8] sm:$0xff] }
  0x32   : > { %578 = vst [vmem:[%s812_s17 + $0x88] sm:$0xff] %v546_v54  ;;  %v547_v5 = vmax.f32 %v515_v55, 0.0  ;;  %v548_v6 = vmax.f32 %v516_v56, 0.0  ;;  %v517_v7 = vadd.f32 %v791_v25, %v478_v57  ;;  %v449_v8 = vmul.f32 %v747_v1, %v410_v53  ;;  %v418_v57 = vld [vmem:[%s759_s10 + $0xf8] sm:$0xff] }
  0x33   : > { %v518_v9 = vadd.f32 %v791_v25, %v479_v59  ;;  %v480_v10 = vadd.f32 %v448_v61, %v377_v60  ;;  %v378_v11 = vadd.f32 %v764_v2, %v339_v62  ;;  %v340_v12 = vmul.f32 %v742_v0, %v301_v58 }
  0x34   : > { %579 = vst [vmem:[%s812_s17 + $0x90] sm:$0xff] %v547_v5  ;;  %580 = vst [vmem:[%s812_s17 + $0x98] sm:$0xff] %v548_v6  ;;  %v549_v16 = vmax.f32 %v517_v7, 0.0  ;;  %v450_v17 = vmul.f32 %v747_v1, %v411_v63  ;;  %v341_v18 = vmul.f32 %v742_v0, %v302_v3  ;;  %v451_v19 = vmul.f32 %v747_v1, %v412_v4 }
  0x35   : > { %v550_v21 = vmax.f32 %v518_v9, 0.0  ;;  %v519_v22 = vadd.f32 %v791_v25, %v480_v10  ;;  %v481_v23 = vadd.f32 %v449_v8, %v378_v11  ;;  %v379_v24 = vadd.f32 %v764_v2, %v340_v12 }
  0x36   : > { %581 = vst [vmem:[%s812_s17 + $0xa0] sm:$0xff] %v549_v16  ;;  %v380_v27 = vadd.f32 %v764_v2, %v341_v18  ;;  %v342_v28 = vmul.f32 %v742_v0, %v303_v13  ;;  %v452_v29 = vmul.f32 %v747_v1, %v413_v14  ;;  %v343_v30 = vmul.f32 %v742_v0, %v304_v15 }
  0x37   : > { %582 = vst [vmem:[%s812_s17 + $0xa8] sm:$0xff] %v550_v21  ;;  %v551_v33 = vmax.f32 %v519_v22, 0.0  ;;  %v520_v34 = vadd.f32 %v791_v25, %v481_v23  ;;  %v482_v35 = vadd.f32 %v450_v17, %v379_v24  ;;  %v453_v36 = vmul.f32 %v747_v1, %v414_v20 }
  0x38   : > { %v483_v37 = vadd.f32 %v451_v19, %v380_v27  ;;  %v381_v38 = vadd.f32 %v764_v2, %v342_v28  ;;  %v382_v39 = vadd.f32 %v764_v2, %v343_v30  ;;  %v344_v40 = vmul.f32 %v742_v0, %v305_v26 }
  0x39   : > { %583 = vst [vmem:[%s812_s17 + $0xb0] sm:$0xff] %v551_v33  ;;  %v552_v43 = vmax.f32 %v520_v34, 0.0  ;;  %v521_v44 = vadd.f32 %v791_v25, %v482_v35  ;;  %v454_v45 = vmul.f32 %v747_v1, %v415_v31  ;;  %v345_v46 = vmul.f32 %v742_v0, %v306_v32 }
  0x3a   : > { %v522_v47 = vadd.f32 %v791_v25, %v483_v37  ;;  %v484_v48 = vadd.f32 %v452_v29, %v381_v38  ;;  %v485_v49 = vadd.f32 %v453_v36, %v382_v39  ;;  %v383_v50 = vadd.f32 %v764_v2, %v344_v40 }
  0x3b   : > { %584 = vst [vmem:[%s812_s17 + $0xb8] sm:$0xff] %v552_v43  ;;  %v553_v53 = vmax.f32 %v521_v44, 0.0  ;;  %v384_v54 = vadd.f32 %v764_v2, %v345_v46  ;;  %v455_v55 = vmul.f32 %v747_v1, %v416_v41  ;;  %v346_v56 = vmul.f32 %v742_v0, %v307_v42 }
  0x3c   : > { %v554_v58 = vmax.f32 %v522_v47, 0.0  ;;  %v523_v59 = vadd.f32 %v791_v25, %v484_v48  ;;  %v524_v60 = vadd.f32 %v791_v25, %v485_v49  ;;  %v486_v61 = vadd.f32 %v454_v45, %v383_v50 }
  0x3d   : > { %585 = vst [vmem:[%s812_s17 + $0xc0] sm:$0xff] %v553_v53  ;;  %v487_v62 = vadd.f32 %v455_v55, %v384_v54  ;;  %v385_v63 = vadd.f32 %v764_v2, %v346_v56  ;;  %v456_v3 = vmul.f32 %v747_v1, %v417_v51  ;;  %v347_v4 = vmul.f32 %v742_v0, %v308_v52 }
  0x3e   : > { %586 = vst [vmem:[%s812_s17 + $0xc8] sm:$0xff] %v554_v58  ;;  %v555_v5 = vmax.f32 %v523_v59, 0.0  ;;  %v556_v6 = vmax.f32 %v524_v60, 0.0  ;;  %v525_v7 = vadd.f32 %v791_v25, %v486_v61  ;;  %v457_v8 = vmul.f32 %v747_v1, %v418_v57 }
  0x3f   : > { %v526_v9 = vadd.f32 %v791_v25, %v487_v62  ;;  %v488_v10 = vadd.f32 %v456_v3, %v385_v63  ;;  %v386_v11 = vadd.f32 %v764_v2, %v347_v4 }
  0x40   : > { %587 = vst [vmem:[%s812_s17 + $0xd0] sm:$0xff] %v555_v5  ;;  %588 = vst [vmem:[%s812_s17 + $0xd8] sm:$0xff] %v556_v6  ;;  %v557_v12 = vmax.f32 %v525_v7, 0.0 }
  0x41   : > { %v558_v13 = vmax.f32 %v526_v9, 0.0  ;;  %v527_v0 = vadd.f32 %v791_v25, %v488_v10  ;;  %v489_v14 = vadd.f32 %v457_v8, %v386_v11 }
  0x42   : > { %589 = vst [vmem:[%s812_s17 + $0xe0] sm:$0xff] %v557_v12 }
  0x43   : > { %590 = vst [vmem:[%s812_s17 + $0xe8] sm:$0xff] %v558_v13  ;;  %v559_v15 = vmax.f32 %v527_v0, 0.0  ;;  %v528_v16 = vadd.f32 %v791_v25, %v489_v14 }
  0x45   : > { %591 = vst [vmem:[%s812_s17 + $0xf0] sm:$0xff] %v559_v15  ;;  %v560_v1 = vmax.f32 %v528_v16, 0.0 }
  0x47   : > { %592 = vst [vmem:[%s812_s17 + $0xf8] sm:$0xff] %v560_v1 }
  0x48 PF: > { %s16_s21 = sadd.s32 1, %s692_s21  }
  0x49   : > { %p13_p4 = scmp.ge.s32.totalorder %s16_s21, 4  }
  0x4b   :  { %15 = sbr.rel (!%p13_p4) target bundleno = 1 (0x1), region = 77 }

// kernel: res_conv_block_with_bn.8
= control target key start
LH: loop header
LB: loop body
LE: loop exit
PB: predicated region body
PF: predicated region fallthrough
CT: control target
= control target key end

     0   :  { %s1431_s15 = smov 0   ;;  %s1433_s16 = smov 0   ;;  %s1767_s0 = inlined_call_operand.vmem [shape: bf16[512,8], index: 0, kind: input, shape index: {}]   ;;  %s1768_s1 = inlined_call_operand.vmem [shape: bf16[8,128], index: 1, kind: input, shape index: {}]   ;;  %s1769_s2 = inlined_call_operand.vmem [shape: f32[512,128], index: 2, kind: output, shape index: {0}]   ;;  %s1770_s3 = inlined_call_operand.vmem [shape: f32[16,128], index: 3, kind: output, shape index: {1}]   ;;  %s1771_s4 = inlined_call_operand.vmem [shape: f32[16,128], index: 4, kind: output, shape index: {2}]  }
   0x1   :  { %s1435_s17 = smov 0  }
   0x2 LB: > { %s27_s18 = sadd.s32 1, %s1399_s16  ;;  %p1113_p0 = scmp.ge.s32.totalorder %s1403_s17, 1  ;;  %s1403_s17 = sphi %s1435_s17, %s15_s17   ;;  %s1399_s16 = sphi %s1433_s16, %s1773_s16   ;;  %s1395_s15 = sphi %s1431_s15, %s1772_s15  }
   0x3   : > { %p29_p1 = scmp.ge.s32.totalorder %s27_s18, 2  ;;  %p194_p2 = scmp.lt.s32.totalorder %s1403_s17, 3 }
   0x5   : > { %s1775_s18 = smov (%p29_p1, %s27_s18), 0  ;;  %p195_p3 = pnand %p1113_p0, %p194_p2 }
   0x6   : > { %v363_v0 = vld [vmem:[%s1768_s1] sm:$0xf] (!%p195_p3)  ;;  %vm493_vm0 = vcmask (!%p195_p3), 1043456   ;;  %s1114_s21 = sshll.u32 (!%p195_p3), %s1395_s15, 5  ;;  %vm444_vm1 = vcmask (!%p195_p3), 64512   ;;  %v1405_v18 = vmov (!%p195_p3), 1.0  }
   0x7   : > { %198 = sbr.rel (%p195_p3) target bundleno = 548 (0x224), region = 28  ;;  %1339 = vmatprep.subr.msk.bf16.mxu0 (!%p195_p3), %vm493_vm0, %v363_v0  ;;  %v495_v1 = vsel (!%p195_p3), %vm493_vm0, %v363_v0, 0  ;;  %p236_p4 = scmp.lt.s32.totalorder (!%p195_p3), %s1114_s21, 63  ;;  %853 = vmatprep.mubr.f32.mxu1 (!%p195_p3), %v1405_v18 }
   0x8   : > { %1242 = vmatpush3.bf16.msra.mxu0 (!%p195_p3), %v495_v1  ;;  %p254_p5 = scmp.lt.s32.totalorder (!%p195_p3), %s1395_s15, 1 }
   0xe   : > { %s1777_s21 = smov (!%p236_p4, %s1114_s21), 63  ;;  %s1779_s15 = smov (!%p254_p5, %s1395_s15), 1 }
   0xf   : > { %s1115_s22 = sshll.u32 %s1777_s21, 2  ;;  %s1117_s26 = sshll.u32 %s1777_s21, 3 }
  0x10   : > { %s1461_s25 = scalar_lea.vmem %s1767_s0, %s1115_s22  ;;  %s1500_s29 = scalar_lea.vmem %s1769_s2, %s1117_s26 }
  0x11   : > { %v1365_v2 = vld [vmem:[%s1461_s25] sm:$0xff]   ;;  %v1366_v3 = vld [vmem:[%s1461_s25 + $0x8] sm:$0xff]   ;;  %v1367_v4 = vld [vmem:[%s1461_s25 + $0x10] sm:$0xff]   ;;  %s1118_s30 = sshll.u32 %s1779_s15, 3 }
  0x12   : > { %1243 = vmatprep.mubr.msk.bf16.mxu0 %vm444_vm1, %v1365_v2  ;;  %v1368_v5 = vld [vmem:[%s1461_s25 + $0x18] sm:$0xff]   ;;  %v1369_v6 = vld [vmem:[%s1461_s25 + $0x20] sm:$0xff]   ;;  %v1370_v7 = vld [vmem:[%s1461_s25 + $0x28] sm:$0xff]   ;;  %s257_s7 = scalar_lea.vmem %s1770_s3, %s1118_s30  ;;  %s261_s10 = scalar_lea.vmem %s1771_s4, %s1118_s30 }
  0x13   : > { %1244 = vmatmul.mubr.msk.bf16.vlgmr.msra.gmra.mrb[0].mxu0 %vm444_vm1, %v1366_v3  ;;  %v1371_v8 = vld [vmem:[%s1461_s25 + $0x30] sm:$0xff]   ;;  %v1372_v9 = vld [vmem:[%s1461_s25 + $0x38] sm:$0xff]   ;;  %v1373_v10 = vld [vmem:[%s1461_s25 + $0x40] sm:$0xff]  }
  0x14   : > { %1247 = vmatprep.mubr.msk.bf16.mxu0 %vm444_vm1, %v1367_v4  ;;  %v1374_v11 = vld [vmem:[%s1461_s25 + $0x48] sm:$0xff]   ;;  %v1375_v12 = vld [vmem:[%s1461_s25 + $0x50] sm:$0xff]   ;;  %v1376_v13 = vld [vmem:[%s1461_s25 + $0x58] sm:$0xff]  }
  0x15   : > { %v1377_v14 = vld [vmem:[%s1461_s25 + $0x60] sm:$0xff]   ;;  %v1378_v15 = vld [vmem:[%s1461_s25 + $0x68] sm:$0xff]   ;;  %v1379_v16 = vld [vmem:[%s1461_s25 + $0x70] sm:$0xff]  }
  0x16   : > { %v1380_v17 = vld [vmem:[%s1461_s25 + $0x78] sm:$0xff]  }
  0x1b   : > { %1248 = vmatmul.mubr.msk.bf16.gmra.mrb[4].mxu0 %vm444_vm1, %v1368_v5 }
  0x1c   : > { %1251 = vmatprep.mubr.msk.bf16.mxu0 %vm444_vm1, %v1369_v6 }
  0x23   : > { %1252 = vmatmul.mubr.msk.bf16.gmra.mrb[8].mxu0 %vm444_vm1, %v1370_v7 }
  0x24   : > { %1255 = vmatprep.mubr.msk.bf16.mxu0 %vm444_vm1, %v1371_v8 }
  0x2b   : > { %1256 = vmatmul.mubr.msk.bf16.gmra.mrb[12].mxu0 %vm444_vm1, %v1372_v9 }
  0x2c   : > { %1259 = vmatprep.mubr.msk.bf16.mxu0 %vm444_vm1, %v1373_v10 }
  0x33   : > { %1260 = vmatmul.mubr.msk.bf16.gmra.mrb[16].mxu0 %vm444_vm1, %v1374_v11 }
  0x34   : > { %1263 = vmatprep.mubr.msk.bf16.mxu0 %vm444_vm1, %v1375_v12 }
  0x3b   : > { %1264 = vmatmul.mubr.msk.bf16.gmra.mrb[20].mxu0 %vm444_vm1, %v1376_v13 }
  0x3c   : > { %1267 = vmatprep.mubr.msk.bf16.mxu0 %vm444_vm1, %v1377_v14 }
  0x43   : > { %1268 = vmatmul.mubr.msk.bf16.gmra.mrb[24].mxu0 %vm444_vm1, %v1378_v15 }
  0x44   : > { %1271 = vmatprep.mubr.msk.bf16.mxu0 %vm444_vm1, %v1379_v16 }
  0x4b   : > { %1272 = vmatmul.mubr.msk.bf16.gmra.mrb[28].mxu0 %vm444_vm1, %v1380_v17 }
  0xe6   : > { %v1502_v19 = vpop.f32.mrb[0].mxu0 }
  0xe7   : > { %759 = vst [vmem:[%s1500_s29 + $0x10] sm:$0xff] %v1502_v19  ;;  %v1506_v20 = vpop.f32.mrb[1].mxu0  ;;  %v1514_v22 = vmul.f32 %v1502_v19, %v1502_v19 }
  0xe8   : > { %757 = vst [vmem:[%s1500_s29] sm:$0xff] %v1506_v20  ;;  %v1510_v21 = vpop.f32.mrb[2].mxu0  ;;  %v1528_v26 = vmul.f32 %v1506_v20, %v1506_v20 }
  0xe9   : > { %760 = vst [vmem:[%s1500_s29 + $0x18] sm:$0xff] %v1510_v21  ;;  %v1281_v23 = vpack.c.bf16 %v1510_v21, %v1502_v19  ;;  %v1522_v24 = vmul.f32 %v1510_v21, %v1510_v21  ;;  %v1524_v25 = vpop.f32.mrb[3].mxu0 }
  0xea   : > { %758 = vst [vmem:[%s1500_s29 + $0x8] sm:$0xff] %v1524_v25  ;;  %v1534_v27 = vmul.f32 %v1524_v25, %v1524_v25  ;;  %v1277_v28 = vpack.c.bf16 %v1524_v25, %v1506_v20 }
  0xeb   : > { %v1313_v29 = vpack.c.bf16 %v1522_v24, %v1514_v22 }
  0xec   : > { %v1309_v30 = vpack.c.bf16 %v1534_v27, %v1528_v26 }
  0xee   : > { %v1542_v31 = vpop.f32.mrb[4].mxu0 }
  0xef   : > { %763 = vst [vmem:[%s1500_s29 + $0x30] sm:$0xff] %v1542_v31  ;;  %v1546_v32 = vpop.f32.mrb[5].mxu0  ;;  %v1554_v34 = vmul.f32 %v1542_v31, %v1542_v31 }
  0xf0   : > { %761 = vst [vmem:[%s1500_s29 + $0x20] sm:$0xff] %v1546_v32  ;;  %v1550_v33 = vpop.f32.mrb[6].mxu0  ;;  %v1568_v38 = vmul.f32 %v1546_v32, %v1546_v32 }
  0xf1   : > { %764 = vst [vmem:[%s1500_s29 + $0x38] sm:$0xff] %v1550_v33  ;;  %v1289_v35 = vpack.c.bf16 %v1550_v33, %v1542_v31  ;;  %v1562_v36 = vmul.f32 %v1550_v33, %v1550_v33  ;;  %v1564_v37 = vpop.f32.mrb[7].mxu0 }
  0xf2   : > { %762 = vst [vmem:[%s1500_s29 + $0x28] sm:$0xff] %v1564_v37  ;;  %v1285_v39 = vpack.c.bf16 %v1564_v37, %v1546_v32  ;;  %v1576_v40 = vmul.f32 %v1564_v37, %v1564_v37 }
  0xf3   : > { %v1321_v41 = vpack.c.bf16 %v1562_v36, %v1554_v34 }
  0xf4   : > { %v1317_v42 = vpack.c.bf16 %v1576_v40, %v1568_v38 }
  0xf6   : > { %v1582_v43 = vpop.f32.mrb[8].mxu0 }
  0xf7   : > { %767 = vst [vmem:[%s1500_s29 + $0x50] sm:$0xff] %v1582_v43  ;;  %v1586_v44 = vpop.f32.mrb[9].mxu0  ;;  %v1594_v46 = vmul.f32 %v1582_v43, %v1582_v43 }
  0xf8   : > { %765 = vst [vmem:[%s1500_s29 + $0x40] sm:$0xff] %v1586_v44  ;;  %v1590_v45 = vpop.f32.mrb[10].mxu0  ;;  %v1608_v50 = vmul.f32 %v1586_v44, %v1586_v44 }
  0xf9   : > { %768 = vst [vmem:[%s1500_s29 + $0x58] sm:$0xff] %v1590_v45  ;;  %v1297_v47 = vpack.c.bf16 %v1590_v45, %v1582_v43  ;;  %v1602_v48 = vmul.f32 %v1590_v45, %v1590_v45  ;;  %v1604_v49 = vpop.f32.mrb[11].mxu0 }
  0xfa   : > { %766 = vst [vmem:[%s1500_s29 + $0x48] sm:$0xff] %v1604_v49  ;;  %v1293_v51 = vpack.c.bf16 %v1604_v49, %v1586_v44  ;;  %v1616_v52 = vmul.f32 %v1604_v49, %v1604_v49 }
  0xfb   : > { %v1329_v53 = vpack.c.bf16 %v1602_v48, %v1594_v46 }
  0xfc   : > { %v1325_v54 = vpack.c.bf16 %v1616_v52, %v1608_v50 }
  0xfe   : > { %v1622_v55 = vpop.f32.mrb[12].mxu0 }
  0xff   : > { %771 = vst [vmem:[%s1500_s29 + $0x70] sm:$0xff] %v1622_v55  ;;  %v1626_v56 = vpop.f32.mrb[13].mxu0  ;;  %v1634_v58 = vmul.f32 %v1622_v55, %v1622_v55 }
 0x100   : > { %769 = vst [vmem:[%s1500_s29 + $0x60] sm:$0xff] %v1626_v56  ;;  %v1630_v57 = vpop.f32.mrb[14].mxu0  ;;  %v1648_v62 = vmul.f32 %v1626_v56, %v1626_v56 }
 0x101   : > { %772 = vst [vmem:[%s1500_s29 + $0x78] sm:$0xff] %v1630_v57  ;;  %v1305_v59 = vpack.c.bf16 %v1630_v57, %v1622_v55  ;;  %v1642_v60 = vmul.f32 %v1630_v57, %v1630_v57  ;;  %v1644_v61 = vpop.f32.mrb[15].mxu0 }
 0x102   : > { %770 = vst [vmem:[%s1500_s29 + $0x68] sm:$0xff] %v1644_v61  ;;  %v1301_v63 = vpack.c.bf16 %v1644_v61, %v1626_v56  ;;  %v1656_v0 = vmul.f32 %v1644_v61, %v1644_v61 }
 0x103   : > { %v1337_v1 = vpack.c.bf16 %v1642_v60, %v1634_v58 }
 0x104   : > { %v1333_v2 = vpack.c.bf16 %v1656_v0, %v1648_v62 }
 0x106   : > { %v1261_v3 = vpop.f32.mrb[16].mxu0 }
 0x107   : > { %775 = vst [vmem:[%s1500_s29 + $0x90] sm:$0xff] %v1261_v3  ;;  %v595_v4 = vpop.f32.mrb[17].mxu0  ;;  %v1664_v6 = vmul.f32 %v1261_v3, %v1261_v3 }
 0x108   : > { %773 = vst [vmem:[%s1500_s29 + $0x80] sm:$0xff] %v595_v4  ;;  %v1262_v5 = vpop.f32.mrb[18].mxu0  ;;  %v1669_v10 = vmul.f32 %v595_v4, %v595_v4 }
 0x109   : > { %776 = vst [vmem:[%s1500_s29 + $0x98] sm:$0xff] %v1262_v5  ;;  %v1279_v7 = vpack.c.bf16 %v1262_v5, %v1261_v3  ;;  %v1667_v8 = vmul.f32 %v1262_v5, %v1262_v5  ;;  %v598_v9 = vpop.f32.mrb[19].mxu0 }
 0x10a   : > { %774 = vst [vmem:[%s1500_s29 + $0x88] sm:$0xff] %v598_v9  ;;  %v1672_v11 = vmul.f32 %v598_v9, %v598_v9  ;;  %v1275_v12 = vpack.c.bf16 %v598_v9, %v595_v4 }
 0x10b   : > { %v1311_v13 = vpack.c.bf16 %v1667_v8, %v1664_v6 }
 0x10c   : > { %1276 = vmatprep.subr.bf16.mxu1 %v1275_v12  ;;  %v1307_v14 = vpack.c.bf16 %v1672_v11, %v1669_v10 }
 0x10d   : > { %1278 = vmatpush3.bf16.msra.mxu1 %v1277_v28 }
 0x10e   : > { %v1265_v15 = vpop.f32.mrb[20].mxu0  ;;  %1280 = vmatprep.subr.bf16.mxu1 %v1279_v7 }
 0x10f   : > { %779 = vst [vmem:[%s1500_s29 + $0xb0] sm:$0xff] %v1265_v15  ;;  %v611_v16 = vpop.f32.mrb[21].mxu0  ;;  %v1683_v3 = vmul.f32 %v1265_v15, %v1265_v15 }
 0x110   : > { %777 = vst [vmem:[%s1500_s29 + $0xa0] sm:$0xff] %v611_v16  ;;  %v1266_v17 = vpop.f32.mrb[22].mxu0  ;;  %v880_v20 = vmul.f32 %v611_v16, %v611_v16 }
 0x111   : > { %780 = vst [vmem:[%s1500_s29 + $0xb8] sm:$0xff] %v1266_v17  ;;  %v1287_v4 = vpack.c.bf16 %v1266_v17, %v1265_v15  ;;  %v883_v5 = vmul.f32 %v1266_v17, %v1266_v17  ;;  %v614_v9 = vpop.f32.mrb[23].mxu0  ;;  %1282 = vmatpush3.bf16.msra.mxu1 %v1281_v23 }
 0x112   : > { %778 = vst [vmem:[%s1500_s29 + $0xa8] sm:$0xff] %v614_v9  ;;  %v1283_v25 = vpack.c.bf16 %v614_v9, %v611_v16  ;;  %v881_v28 = vmul.f32 %v614_v9, %v614_v9 }
 0x113   : > { %v1319_v7 = vpack.c.bf16 %v883_v5, %v1683_v3 }
 0x114   : > { %1284 = vmatprep.subr.bf16.mxu1 %v1283_v25  ;;  %v1315_v12 = vpack.c.bf16 %v881_v28, %v880_v20 }
 0x115   : > { %1286 = vmatpush3.bf16.msra.mxu1 %v1285_v39 }
 0x116   : > { %v1269_v15 = vpop.f32.mrb[24].mxu0  ;;  %1288 = vmatprep.subr.bf16.mxu1 %v1287_v4 }
 0x117   : > { %783 = vst [vmem:[%s1500_s29 + $0xd0] sm:$0xff] %v1269_v15  ;;  %v627_v17 = vpop.f32.mrb[25].mxu0  ;;  %v886_v21 = vmul.f32 %v1269_v15, %v1269_v15 }
 0x118   : > { %781 = vst [vmem:[%s1500_s29 + $0xc0] sm:$0xff] %v627_v17  ;;  %v1270_v19 = vpop.f32.mrb[26].mxu0  ;;  %v884_v32 = vmul.f32 %v627_v17, %v627_v17 }
 0x119   : > { %784 = vst [vmem:[%s1500_s29 + $0xd8] sm:$0xff] %v1270_v19  ;;  %v1295_v23 = vpack.c.bf16 %v1270_v19, %v1269_v15  ;;  %v887_v16 = vmul.f32 %v1270_v19, %v1270_v19  ;;  %v630_v3 = vpop.f32.mrb[27].mxu0  ;;  %1290 = vmatpush3.bf16.msra.mxu1 %v1289_v35 }
 0x11a   : > { %782 = vst [vmem:[%s1500_s29 + $0xc8] sm:$0xff] %v630_v3  ;;  %v1291_v37 = vpack.c.bf16 %v630_v3, %v627_v17  ;;  %v885_v39 = vmul.f32 %v630_v3, %v630_v3 }
 0x11b   : > { %v1327_v4 = vpack.c.bf16 %v887_v16, %v886_v21 }
 0x11c   : > { %1292 = vmatprep.subr.bf16.mxu1 %v1291_v37  ;;  %v1323_v5 = vpack.c.bf16 %v885_v39, %v884_v32 }
 0x11d   : > { %1294 = vmatpush3.bf16.msra.mxu1 %v1293_v51 }
 0x11e   : > { %v1273_v9 = vpop.f32.mrb[28].mxu0  ;;  %1296 = vmatprep.subr.bf16.mxu1 %v1295_v23 }
 0x11f   : > { %787 = vst [vmem:[%s1500_s29 + $0xf0] sm:$0xff] %v1273_v9  ;;  %v643_v20 = vpop.f32.mrb[29].mxu0  ;;  %v890_v33 = vmul.f32 %v1273_v9, %v1273_v9 }
 0x120   : > { %785 = vst [vmem:[%s1500_s29 + $0xe0] sm:$0xff] %v643_v20  ;;  %v1274_v31 = vpop.f32.mrb[30].mxu0  ;;  %v888_v15 = vmul.f32 %v643_v20, %v643_v20 }
 0x121   : > { %788 = vst [vmem:[%s1500_s29 + $0xf8] sm:$0xff] %v1274_v31  ;;  %v1303_v35 = vpack.c.bf16 %v1274_v31, %v1273_v9  ;;  %v891_v25 = vmul.f32 %v1274_v31, %v1274_v31  ;;  %v646_v28 = vpop.f32.mrb[31].mxu0  ;;  %1298 = vmatpush3.bf16.msra.mxu1 %v1297_v47 }
 0x122   : > { %786 = vst [vmem:[%s1500_s29 + $0xe8] sm:$0xff] %v646_v28  ;;  %v1299_v17 = vpack.c.bf16 %v646_v28, %v643_v20  ;;  %v889_v44 = vmul.f32 %v646_v28, %v646_v28 }
 0x123   : > { %v1335_v49 = vpack.c.bf16 %v891_v25, %v890_v33 }
 0x124   : > { %v1331_v51 = vpack.c.bf16 %v889_v44, %v888_v15  ;;  %1300 = vmatprep.subr.bf16.mxu1 %v1299_v17 }
 0x125   : > { %1302 = vmatpush3.bf16.msra.mxu1 %v1301_v63 }
 0x126   : > { %1304 = vmatprep.subr.bf16.mxu1 %v1303_v35 }
 0x129   : > { %1306 = vmatpush3.bf16.msra.mxu1 %v1305_v59 }
 0x12a   : > { %1308 = vmatprep.subr.bf16.mxu1 %v1307_v14 }
 0x12c   : > { %854 = vmatmul.mubr.f32.vlgmr.msra.gmra.mrb[0].mxu1 %v1405_v18 }
 0x12d   : > { %1310 = vmatpush3.bf16.msra.mxu1 %v1309_v30  ;;  %956 = vmatprep.mubr.f32.mxu1 %v1405_v18 }
 0x12e   : > { %1312 = vmatprep.subr.bf16.mxu1 %v1311_v13 }
 0x131   : > { %1314 = vmatpush3.bf16.msra.mxu1 %v1313_v29 }
 0x132   : > { %1316 = vmatprep.subr.bf16.mxu1 %v1315_v12 }
 0x135   : > { %1318 = vmatpush3.bf16.msra.mxu1 %v1317_v42 }
 0x136   : > { %1320 = vmatprep.subr.bf16.mxu1 %v1319_v7 }
 0x139   : > { %1322 = vmatpush3.bf16.msra.mxu1 %v1321_v41 }
 0x13a   : > { %1324 = vmatprep.subr.bf16.mxu1 %v1323_v5 }
 0x13d   : > { %1326 = vmatpush3.bf16.msra.mxu1 %v1325_v54 }
 0x13e   : > { %1328 = vmatprep.subr.bf16.mxu1 %v1327_v4 }
 0x141   : > { %1330 = vmatpush3.bf16.msra.mxu1 %v1329_v53 }
 0x142   : > { %1332 = vmatprep.subr.bf16.mxu1 %v1331_v51 }
 0x145   : > { %1334 = vmatpush3.bf16.msra.mxu1 %v1333_v2 }
 0x146   : > { %1336 = vmatprep.subr.bf16.mxu1 %v1335_v49 }
 0x149   : > { %1338 = vmatpush3.bf16.msra.mxu1 %v1337_v1 }
 0x14c   : > { %957 = vmatmul.mubr.f32.vlgmr.msra.gmra.mrb[2].mxu1 %v1405_v18 }
 0x1ff   : > { %v1203_v22 = vpop.f32.mrb[0].mxu1 }
 0x200   : > { %v1204_v24 = vpop.f32.mrb[1].mxu1 }
 0x201   : > { %v1205_v26 = vadd.f32 %v1204_v24, %v1203_v22 }
 0x203   : > { %859 = vst [vmem:[%s257_s7] sm:$0xff] %v1205_v26 }
 0x21f   : > { %v1238_v27 = vpop.f32.mrb[2].mxu1 }
 0x220   : > { %v1239_v29 = vpop.f32.mrb[3].mxu1 }
 0x221   : > { %v1240_v30 = vadd.f32 %v1239_v29, %v1238_v27 }
 0x223   : > { %962 = vst [vmem:[%s261_s10] sm:$0xff] %v1240_v30 }
 0x224 PF: > { %s15_s17 = sadd.s32 1, %s1403_s17   ;;  %s1772_s15 = smov %s1399_s16 }
 0x225   : > { %p12_p6 = scmp.ge.s32.totalorder %s15_s17, 4   ;;  %s1773_s16 = smov %s1775_s18 }
 0x227   :  { %14 = sbr.rel (!%p12_p6) target bundleno = 2 (0x2), region = 93 }

</bundles_post_ra>
